<compile_context>
chip_gen: v5e
topology: v5e:2x2
jax: 0.10.0
libtpu: 0.0.40
codegen_flags: <defaults>
</compile_context>

<pallas_src>
import functools

import jax
import jax.numpy as jnp
import numpy as np
from jax.experimental import pallas as pl
from jax.experimental.pallas import tpu as pltpu

EPS = 1e-5


# ----------------------------------------------------------------------------------
# Kernel 1: conv1 (3x3, stride baked into the parity slabs) + per-tile BN1 partial stats
# ----------------------------------------------------------------------------------
def _conv1_kernel_factory(stride, Ho, Wo, Cin, Cout, Hs):
    M = Ho * Wo

    def kernel(slabs_ref, w1_ref, y1_ref, st1_ref, patches_ref):
        # Assemble the (M, 9*Cin) im2col matrix in VMEM from the padded input slabs.
        for dy in range(3):
            for dx in range(3):
                t = 3 * dy + dx
                if stride == 1:
                    tap = slabs_ref[:, dy:dy + Ho, dx:dx + Wo, :]
                else:
                    # parity slab p holds xpad[py::2, px::2]; tap(dy,dx) is a plain slice
                    p = 2 * (dy % 2) + (dx % 2)
                    r0 = p * Hs + dy // 2
                    c0 = dx // 2
                    tap = slabs_ref[:, r0:r0 + Ho, c0:c0 + Wo, :]
                patches_ref[:, t * Cin:(t + 1) * Cin] = tap.reshape(M, Cin)

        # One fused MXU matmul: bf16 operands, f32 accumulation.
        acc = jnp.dot(patches_ref[...].astype(jnp.bfloat16), w1_ref[...],
                      preferred_element_type=jnp.float32)            # (M, Cout)
        y1_ref[...] = acc.reshape(1, Ho, Wo, Cout)

        # Single-pass partial BN statistics for this tile (sum, sum of squares).
        st1_ref[:, 0:1, :] = jnp.sum(acc, axis=0, keepdims=True).reshape(1, 1, Cout)
        st1_ref[:, 1:2, :] = jnp.sum(acc * acc, axis=0, keepdims=True).reshape(1, 1, Cout)

    return kernel


# ----------------------------------------------------------------------------------
# Kernel 2: BN1 affine + ReLU + conv2 (3x3, stride 1) + per-tile BN2 partial stats
# ----------------------------------------------------------------------------------
def _conv2_kernel_factory(Ho, Wo, Cout):
    M = Ho * Wo

    def kernel(y1_ref, s1_ref, t1_ref, w2_ref, y2_ref, st2_ref, pad_ref, patches_ref):
        # BN1 (precomputed fused scale/shift) + ReLU.
        h = jnp.maximum(
            y1_ref[...] * s1_ref[...].reshape(1, 1, 1, Cout)
            + t1_ref[...].reshape(1, 1, 1, Cout), 0.0)

        # Zero-padded conv2 input: write interior, zero ONLY the 1-pixel halo.
        pad_ref[:, 1:Ho + 1, 1:Wo + 1, :] = h
        zrow = jnp.zeros((1, 1, Wo + 2, Cout), jnp.float32)
        zcol = jnp.zeros((1, Ho, 1, Cout), jnp.float32)
        pad_ref[:, 0:1, :, :] = zrow
        pad_ref[:, Ho + 1:Ho + 2, :, :] = zrow
        pad_ref[:, 1:Ho + 1, 0:1, :] = zcol
        pad_ref[:, 1:Ho + 1, Wo + 1:Wo + 2, :] = zcol

        # im2col for the stride-1 conv2, then one fused bf16 matmul with f32 accumulation.
        for dy in range(3):
            for dx in range(3):
                t = 3 * dy + dx
                tap = pad_ref[:, dy:dy + Ho, dx:dx + Wo, :]
                patches_ref[:, t * Cout:(t + 1) * Cout] = tap.reshape(M, Cout)

        acc = jnp.dot(patches_ref[...].astype(jnp.bfloat16), w2_ref[...],
                      preferred_element_type=jnp.float32)            # (M, Cout)
        y2_ref[...] = acc.reshape(1, Ho, Wo, Cout)

        st2_ref[:, 0:1, :] = jnp.sum(acc, axis=0, keepdims=True).reshape(1, 1, Cout)
        st2_ref[:, 1:2, :] = jnp.sum(acc * acc, axis=0, keepdims=True).reshape(1, 1, Cout)

    return kernel


# ----------------------------------------------------------------------------------
# Kernel 3: BN2 affine + residual add (shortcut pre-padded to Cout) + ReLU
# ----------------------------------------------------------------------------------
def _bn2_residual_kernel_factory(Cout):
    def kernel(y2_ref, s2_ref, t2_ref, sc_ref, out_ref):
        o = y2_ref[...] * s2_ref[...].reshape(1, 1, 1, Cout) \
            + t2_ref[...].reshape(1, 1, 1, Cout)
        out_ref[...] = jnp.maximum(o + sc_ref[...], 0.0)
    return kernel


@functools.partial(jax.jit, static_argnames=("stride",))
def res_basic_block(x, w1, g1, b1, w2, g2, b2, *, stride=1):
    """x: (N, Cin, H, W) float32 NCHW. Weights in PyTorch layout (Cout, Cin, 3, 3)."""
    N, Cin, H, W = x.shape
    Cout = w1.shape[0]
    identity = (stride == 1 and Cin == Cout)
    if not identity:
        assert stride == 2, "DownsampleA requires stride == 2"
        assert H % 2 == 0 and W % 2 == 0, "stride-2 path assumes even spatial dims"
    Ho = (H - 1) // stride + 1
    Wo = (W - 1) // stride + 1
    M_total = N * Ho * Wo
    f32 = jnp.float32

    # ---- layout glue: NCHW -> NHWC, zero pad spatially ----
    xn = jnp.transpose(x, (0, 2, 3, 1)).astype(f32)                  # (N, H, W, Cin)
    xpad = jnp.pad(xn, ((0, 0), (1, 1), (1, 1), (0, 0)))             # (N, H+2, W+2, Cin)

    if stride == 1:
        Hs, Ws = Ho + 2, Wo + 2
        slabs = xpad                                                  # (N, Hs, Ws, Cin)
    else:
        # Parity decomposition: slab[2*py+px] = xpad[:, py::2, px::2, :] so every
        # stride-2 conv tap is an unstrided slice inside the kernel. 1x memory.
        Hs, Ws = Ho + 1, Wo + 1
        parts = [xpad[:, py::2, px::2, :] for py in range(2) for px in range(2)]
        slabs = jnp.concatenate(parts, axis=1)                        # (N, 4*Hs, Ws, Cin)
    slab_rows = slabs.shape[1]

    # im2col weight layout, bf16 for the MXU (accumulation stays f32 in-kernel)
    w1r = jnp.transpose(w1, (2, 3, 1, 0)).reshape(9 * Cin, Cout).astype(jnp.bfloat16)
    w2r = jnp.transpose(w2, (2, 3, 1, 0)).reshape(9 * Cout, Cout).astype(jnp.bfloat16)

    par = pltpu.CompilerParams(dimension_semantics=("parallel",))

    # ---- pass 1: conv1 per image tile + BN1 partial stats ----
    k1 = _conv1_kernel_factory(stride, Ho, Wo, Cin, Cout, Hs)
    y1, st1 = pl.pallas_call(
        k1,
        grid=(N,),
        out_shape=(jax.ShapeDtypeStruct((N, Ho, Wo, Cout), f32),
                   jax.ShapeDtypeStruct((N, 2, Cout), f32)),
        in_specs=[pl.BlockSpec((1, slab_rows, Ws, Cin), lambda b: (b, 0, 0, 0)),
                  pl.BlockSpec((9 * Cin, Cout), lambda b: (0, 0))],
        out_specs=(pl.BlockSpec((1, Ho, Wo, Cout), lambda b: (b, 0, 0, 0)),
                   pl.BlockSpec((1, 2, Cout), lambda b: (b, 0, 0))),
        scratch_shapes=[pltpu.VMEM((Ho * Wo, 9 * Cin), f32)],
        compiler_params=par,
    )(slabs, w1r)

    # ---- BN1 global batch stats -> fused scale/shift (f32, in XLA) ----
    s1 = jnp.sum(st1, axis=0)                                         # (2, Cout)
    mean1 = s1[0] / M_total
    var1 = jnp.maximum(s1[1] / M_total - mean1 * mean1, 0.0)
    inv1 = jax.lax.rsqrt(var1 + EPS)
    scale1 = (g1.astype(f32) * inv1).reshape(1, Cout)
    shift1 = (b1.astype(f32) - mean1 * g1.astype(f32) * inv1).reshape(1, Cout)

    # ---- pass 2: BN1 apply + ReLU + conv2 + BN2 partial stats ----
    k2 = _conv2_kernel_factory(Ho, Wo, Cout)
    y2, st2 = pl.pallas_call(
        k2,
        grid=(N,),
        out_shape=(jax.ShapeDtypeStruct((N, Ho, Wo, Cout), f32),
                   jax.ShapeDtypeStruct((N, 2, Cout), f32)),
        in_specs=[pl.BlockSpec((1, Ho, Wo, Cout), lambda b: (b, 0, 0, 0)),
                  pl.BlockSpec((1, Cout), lambda b: (0, 0)),
                  pl.BlockSpec((1, Cout), lambda b: (0, 0)),
                  pl.BlockSpec((9 * Cout, Cout), lambda b: (0, 0))],
        out_specs=(pl.BlockSpec((1, Ho, Wo, Cout), lambda b: (b, 0, 0, 0)),
                   pl.BlockSpec((1, 2, Cout), lambda b: (b, 0, 0))),
        scratch_shapes=[pltpu.VMEM((1, Ho + 2, Wo + 2, Cout), f32),
                        pltpu.VMEM((Ho * Wo, 9 * Cout), f32)],
        compiler_params=par,
    )(y1, scale1, shift1, w2r)

    s2 = jnp.sum(st2, axis=0)
    mean2 = s2[0] / M_total
    var2 = jnp.maximum(s2[1] / M_total - mean2 * mean2, 0.0)
    inv2 = jax.lax.rsqrt(var2 + EPS)
    scale2 = (g2.astype(f32) * inv2).reshape(1, Cout)
    shift2 = (b2.astype(f32) - mean2 * g2.astype(f32) * inv2).reshape(1, Cout)

    # Shortcut: identity, or DownsampleA subsample + zero channel pad done in XLA so the
    # kernel performs a single full-width add/store (no channel-masked partial stores).
    if identity:
        scut = xn
    else:
        scut = jnp.pad(xn[:, ::stride, ::stride, :],
                       ((0, 0), (0, 0), (0, 0), (0, Cout - Cin)))

    # ---- pass 3: BN2 affine + residual + ReLU ----
    k3 = _bn2_residual_kernel_factory(Cout)
    out_nhwc = pl.pallas_call(
        k3,
        grid=(N,),
        out_shape=jax.ShapeDtypeStruct((N, Ho, Wo, Cout), f32),
        in_specs=[pl.BlockSpec((1, Ho, Wo, Cout), lambda b: (b, 0, 0, 0)),
                  pl.BlockSpec((1, Cout), lambda b: (0, 0)),
                  pl.BlockSpec((1, Cout), lambda b: (0, 0)),
                  pl.BlockSpec((1, Ho, Wo, Cout), lambda b: (b, 0, 0, 0))],
        out_specs=pl.BlockSpec((1, Ho, Wo, Cout), lambda b: (b, 0, 0, 0)),
        compiler_params=par,
    )(y2, scale2, shift2, scut)

    return jnp.transpose(out_nhwc, (0, 3, 1, 2))                      # back to NCHW


# ----------------------------------------------------------------------------------
# Pure-JAX reference of the PyTorch forward (training-mode BN), highest precision.
# ----------------------------------------------------------------------------------
def ref_forward(x, w1, g1, b1, w2, g2, b2, stride):
    dn = ("NCHW", "OIHW", "NCHW")

    def bn(y, g, b):
        m = jnp.mean(y, axis=(0, 2, 3), keepdims=True)
        v = jnp.mean((y - m) ** 2, axis=(0, 2, 3), keepdims=True)
        return (y - m) * jax.lax.rsqrt(v + EPS) * g.reshape(1, -1, 1, 1) \
            + b.reshape(1, -1, 1, 1)

    h = jax.lax.conv_general_dilated(x, w1, (stride, stride), ((1, 1), (1, 1)),
                                     dimension_numbers=dn,
                                     precision=jax.lax.Precision.HIGHEST)
    h = jnp.maximum(bn(h, g1, b1), 0.0)
    o = jax.lax.conv_general_dilated(h, w2, (1, 1), ((1, 1), (1, 1)),
                                     dimension_numbers=dn,
                                     precision=jax.lax.Precision.HIGHEST)
    o = bn(o, g2, b2)
    Cin, Cout = x.shape[1], w1.shape[0]
    if stride == 1 and Cin == Cout:
        sc = x
    else:
        sc = x[:, :, ::stride, ::stride]
        sc = jnp.pad(sc, ((0, 0), (0, Cout - Cin), (0, 0), (0, 0)))
    return jnp.maximum(o + sc, 0.0)


def _init_params(key, inplanes, planes):
    k1, k2, k3, k4, k5, k6 = jax.random.split(key, 6)
    w1 = jax.random.normal(k1, (planes, inplanes, 3, 3), jnp.float32) * (
        1.0 / np.sqrt(9 * inplanes))
    w2 = jax.random.normal(k2, (planes, planes, 3, 3), jnp.float32) * (
        1.0 / np.sqrt(9 * planes))
    g1 = 1.0 + 0.1 * jax.random.normal(k3, (planes,), jnp.float32)
    b1 = 0.1 * jax.random.normal(k4, (planes,), jnp.float32)
    g2 = 1.0 + 0.1 * jax.random.normal(k5, (planes,), jnp.float32)
    b2 = 0.1 * jax.random.normal(k6, (planes,), jnp.float32)
    return w1, g1, b1, w2, g2, b2


if __name__ == "__main__":
    key = jax.random.PRNGKey(0)

    # Case 1: downsampling block (stride=2, inplanes != planes -> DownsampleA shortcut)
    kx, kp = jax.random.split(key)
    N, inplanes, planes, H, W, stride = 2, 4, 8, 16, 16, 2
    x = jax.random.normal(kx, (N, inplanes, H, W), jnp.float32)
    params = _init_params(kp, inplanes, planes)
    out = jax.block_until_ready(res_basic_block(x, *params, stride=stride))
    ref = ref_forward(x, *params, stride)
    assert out.shape == (N, planes, H // stride, W // stride)
    err = float(jnp.max(jnp.abs(out - ref)))
    assert err < 5e-2, f"case1 max abs err {err}"   # bf16 MXU operands, f32 accumulation

    # Case 2: identity-shortcut block (stride=1, inplanes == planes)
    kx2, kp2 = jax.random.split(jax.random.PRNGKey(1))
    x2 = jax.random.normal(kx2, (2, 8, 16, 16), jnp.float32)
    params2 = _init_params(kp2, 8, 8)
    out2 = jax.block_until_ready(res_basic_block(x2, *params2, stride=1))
    ref2 = ref_forward(x2, *params2, 1)
    assert out2.shape == (2, 8, 16, 16)
    err2 = float(jnp.max(jnp.abs(out2 - ref2)))
    assert err2 < 5e-2, f"case2 max abs err {err2}"

    print("KERNEL_OK")
</pallas_src>

<mosaic_0001>
module attributes {stable_mosaic.version = 11 : i64} {
  func.func @kernel(%arg0: i32, %arg1: memref<1x36x9x4xf32, #tpu.memory_space<vmem>>, %arg2: memref<36x8xbf16, #tpu.memory_space<vmem>>, %arg3: memref<1x8x8x8xf32, #tpu.memory_space<vmem>>, %arg4: memref<1x2x8xf32, #tpu.memory_space<vmem>>, %arg5: memref<64x36xf32, #tpu.memory_space<vmem>>) attributes {dimension_semantics = [#tpu.dimension_semantics<parallel>], iteration_bounds = array<i64: 2>, scalar_prefetch = 0 : i64, scratch_operands = 1 : i64, tpu.core_type = #tpu.core_type<tc>, window_params = [{transform_indices = @transform_0, window_bounds = array<i64: 1, 36, 9, 4>}, {pipeline_mode = #tpu.pipeline_mode<synchronous>, transform_indices = @transform_1, window_bounds = array<i64: 36, 8>}, {transform_indices = @transform_2, window_bounds = array<i64: 1, 8, 8, 8>}, {transform_indices = @transform_3, window_bounds = array<i64: 1, 2, 8>}]} {
    %c0 = arith.constant 0 : index
    %c0_0 = arith.constant 0 : index
    %c0_1 = arith.constant 0 : index
    %c0_2 = arith.constant 0 : index
    %0 = vector.load %arg1[%c0, %c0_0, %c0_1, %c0_2] : memref<1x36x9x4xf32, #tpu.memory_space<vmem>>, vector<1x8x8x4xf32>
    %1 = vector.shape_cast %0 : vector<1x8x8x4xf32> to vector<64x4xf32>
    %c0_3 = arith.constant 0 : index
    %c0_4 = arith.constant 0 : index
    %2 = vector.load %arg5[%c0_3, %c0_4] : memref<64x36xf32, #tpu.memory_space<vmem>>, vector<64x4xf32>
    tpu.vector_store %arg5[%c0_3, %c0_4], %1 {strides = array<i32>} : memref<64x36xf32, #tpu.memory_space<vmem>>, vector<64x4xf32>,
    %c0_5 = arith.constant 0 : index
    %c9 = arith.constant 9 : index
    %c0_6 = arith.constant 0 : index
    %c0_7 = arith.constant 0 : index
    %3 = vector.load %arg1[%c0_5, %c9, %c0_6, %c0_7] : memref<1x36x9x4xf32, #tpu.memory_space<vmem>>, vector<1x8x8x4xf32>
    %4 = vector.shape_cast %3 : vector<1x8x8x4xf32> to vector<64x4xf32>
    %c0_8 = arith.constant 0 : index
    %c4 = arith.constant 4 : index
    %5 = vector.load %arg5[%c0_8, %c4] : memref<64x36xf32, #tpu.memory_space<vmem>>, vector<64x4xf32>
    tpu.vector_store %arg5[%c0_8, %c4], %4 {strides = array<i32>} : memref<64x36xf32, #tpu.memory_space<vmem>>, vector<64x4xf32>,
    %c0_9 = arith.constant 0 : index
    %c0_10 = arith.constant 0 : index
    %c1 = arith.constant 1 : index
    %c0_11 = arith.constant 0 : index
    %6 = vector.load %arg1[%c0_9, %c0_10, %c1, %c0_11] : memref<1x36x9x4xf32, #tpu.memory_space<vmem>>, vector<1x8x8x4xf32>
    %7 = vector.shape_cast %6 : vector<1x8x8x4xf32> to vector<64x4xf32>
    %c0_12 = arith.constant 0 : index
    %c8 = arith.constant 8 : index
    %8 = vector.load %arg5[%c0_12, %c8] : memref<64x36xf32, #tpu.memory_space<vmem>>, vector<64x4xf32>
    tpu.vector_store %arg5[%c0_12, %c8], %7 {strides = array<i32>} : memref<64x36xf32, #tpu.memory_space<vmem>>, vector<64x4xf32>,
    %c0_13 = arith.constant 0 : index
    %c18 = arith.constant 18 : index
    %c0_14 = arith.constant 0 : index
    %c0_15 = arith.constant 0 : index
    %9 = vector.load %arg1[%c0_13, %c18, %c0_14, %c0_15] : memref<1x36x9x4xf32, #tpu.memory_space<vmem>>, vector<1x8x8x4xf32>
    %10 = vector.shape_cast %9 : vector<1x8x8x4xf32> to vector<64x4xf32>
    %c0_16 = arith.constant 0 : index
    %c12 = arith.constant 12 : index
    %11 = vector.load %arg5[%c0_16, %c12] : memref<64x36xf32, #tpu.memory_space<vmem>>, vector<64x4xf32>
    tpu.vector_store %arg5[%c0_16, %c12], %10 {strides = array<i32>} : memref<64x36xf32, #tpu.memory_space<vmem>>, vector<64x4xf32>,
    %c0_17 = arith.constant 0 : index
    %c27 = arith.constant 27 : index
    %c0_18 = arith.constant 0 : index
    %c0_19 = arith.constant 0 : index
    %12 = vector.load %arg1[%c0_17, %c27, %c0_18, %c0_19] : memref<1x36x9x4xf32, #tpu.memory_space<vmem>>, vector<1x8x8x4xf32>
    %13 = vector.shape_cast %12 : vector<1x8x8x4xf32> to vector<64x4xf32>
    %c0_20 = arith.constant 0 : index
    %c16 = arith.constant 16 : index
    %14 = vector.load %arg5[%c0_20, %c16] : memref<64x36xf32, #tpu.memory_space<vmem>>, vector<64x4xf32>
    tpu.vector_store %arg5[%c0_20, %c16], %13 {strides = array<i32>} : memref<64x36xf32, #tpu.memory_space<vmem>>, vector<64x4xf32>,
    %c0_21 = arith.constant 0 : index
    %c18_22 = arith.constant 18 : index
    %c1_23 = arith.constant 1 : index
    %c0_24 = arith.constant 0 : index
    %15 = vector.load %arg1[%c0_21, %c18_22, %c1_23, %c0_24] : memref<1x36x9x4xf32, #tpu.memory_space<vmem>>, vector<1x8x8x4xf32>
    %16 = vector.shape_cast %15 : vector<1x8x8x4xf32> to vector<64x4xf32>
    %c0_25 = arith.constant 0 : index
    %c20 = arith.constant 20 : index
    %17 = vector.load %arg5[%c0_25, %c20] : memref<64x36xf32, #tpu.memory_space<vmem>>, vector<64x4xf32>
    tpu.vector_store %arg5[%c0_25, %c20], %16 {strides = array<i32>} : memref<64x36xf32, #tpu.memory_space<vmem>>, vector<64x4xf32>,
    %c0_26 = arith.constant 0 : index
    %c1_27 = arith.constant 1 : index
    %c0_28 = arith.constant 0 : index
    %c0_29 = arith.constant 0 : index
    %18 = vector.load %arg1[%c0_26, %c1_27, %c0_28, %c0_29] : memref<1x36x9x4xf32, #tpu.memory_space<vmem>>, vector<1x8x8x4xf32>
    %19 = vector.shape_cast %18 : vector<1x8x8x4xf32> to vector<64x4xf32>
    %c0_30 = arith.constant 0 : index
    %c24 = arith.constant 24 : index
    %20 = vector.load %arg5[%c0_30, %c24] : memref<64x36xf32, #tpu.memory_space<vmem>>, vector<64x4xf32>
    tpu.vector_store %arg5[%c0_30, %c24], %19 {strides = array<i32>} : memref<64x36xf32, #tpu.memory_space<vmem>>, vector<64x4xf32>,
    %c0_31 = arith.constant 0 : index
    %c10 = arith.constant 10 : index
    %c0_32 = arith.constant 0 : index
    %c0_33 = arith.constant 0 : index
    %21 = vector.load %arg1[%c0_31, %c10, %c0_32, %c0_33] : memref<1x36x9x4xf32, #tpu.memory_space<vmem>>, vector<1x8x8x4xf32>
    %22 = vector.shape_cast %21 : vector<1x8x8x4xf32> to vector<64x4xf32>
    %c0_34 = arith.constant 0 : index
    %c28 = arith.constant 28 : index
    %23 = vector.load %arg5[%c0_34, %c28] : memref<64x36xf32, #tpu.memory_space<vmem>>, vector<64x4xf32>
    tpu.vector_store %arg5[%c0_34, %c28], %22 {strides = array<i32>} : memref<64x36xf32, #tpu.memory_space<vmem>>, vector<64x4xf32>,
    %c0_35 = arith.constant 0 : index
    %c1_36 = arith.constant 1 : index
    %c1_37 = arith.constant 1 : index
    %c0_38 = arith.constant 0 : index
    %24 = vector.load %arg1[%c0_35, %c1_36, %c1_37, %c0_38] : memref<1x36x9x4xf32, #tpu.memory_space<vmem>>, vector<1x8x8x4xf32>
    %25 = vector.shape_cast %24 : vector<1x8x8x4xf32> to vector<64x4xf32>
    %c0_39 = arith.constant 0 : index
    %c32 = arith.constant 32 : index
    %26 = vector.load %arg5[%c0_39, %c32] : memref<64x36xf32, #tpu.memory_space<vmem>>, vector<64x4xf32>
    tpu.vector_store %arg5[%c0_39, %c32], %25 {strides = array<i32>} : memref<64x36xf32, #tpu.memory_space<vmem>>, vector<64x4xf32>,
    %c0_40 = arith.constant 0 : index
    %c0_41 = arith.constant 0 : index
    %27 = vector.load %arg5[%c0_40, %c0_41] : memref<64x36xf32, #tpu.memory_space<vmem>>, vector<64x36xf32>
    %28 = arith.truncf %27 : vector<64x36xf32> to vector<64x36xbf16>
    %c0_42 = arith.constant 0 : index
    %c0_43 = arith.constant 0 : index
    %29 = vector.load %arg2[%c0_42, %c0_43] : memref<36x8xbf16, #tpu.memory_space<vmem>>, vector<36x8xbf16>
    %cst = arith.constant dense<0.000000e+00> : vector<64x8xf32>
    %30 = tpu.matmul %28, %29, %cst {dimension_numbers = #tpu.dot_dimension_numbers<[1], [0], [0], [1], [0, 0, 1, 1], [], []>} : vector<64x36xbf16>, vector<36x8xbf16>, vector<64x8xf32> -> vector<64x8xf32>
    %31 = vector.shape_cast %30 : vector<64x8xf32> to vector<1x8x8x8xf32>
    %c0_44 = arith.constant 0 : index
    %c0_45 = arith.constant 0 : index
    %c0_46 = arith.constant 0 : index
    %c0_47 = arith.constant 0 : index
    %32 = vector.load %arg3[%c0_44, %c0_45, %c0_46, %c0_47] : memref<1x8x8x8xf32, #tpu.memory_space<vmem>>, vector<1x8x8x8xf32>
    tpu.vector_store %arg3[%c0_44, %c0_45, %c0_46, %c0_47], %31 {strides = array<i32>} : memref<1x8x8x8xf32, #tpu.memory_space<vmem>>, vector<1x8x8x8xf32>,
    %cst_48 = arith.constant dense<0.000000e+00> : vector<8xf32>
    %33 = vector.multi_reduction <add>, %30, %cst_48 [0] : vector<64x8xf32> to vector<8xf32>
    %34 = vector.shape_cast %33 : vector<8xf32> to vector<1x8xf32>
    %35 = vector.shape_cast %34 : vector<1x8xf32> to vector<1x1x8xf32>
    %c0_49 = arith.constant 0 : index
    %c0_50 = arith.constant 0 : index
    %c0_51 = arith.constant 0 : index
    %36 = vector.load %arg4[%c0_49, %c0_50, %c0_51] : memref<1x2x8xf32, #tpu.memory_space<vmem>>, vector<1x1x8xf32>
    tpu.vector_store %arg4[%c0_49, %c0_50, %c0_51], %35 {strides = array<i32>} : memref<1x2x8xf32, #tpu.memory_space<vmem>>, vector<1x1x8xf32>,
    %37 = arith.mulf %30, %30 : vector<64x8xf32>
    %cst_52 = arith.constant dense<0.000000e+00> : vector<8xf32>
    %38 = vector.multi_reduction <add>, %37, %cst_52 [0] : vector<64x8xf32> to vector<8xf32>
    %39 = vector.shape_cast %38 : vector<8xf32> to vector<1x8xf32>
    %40 = vector.shape_cast %39 : vector<1x8xf32> to vector<1x1x8xf32>
    %c0_53 = arith.constant 0 : index
    %c1_54 = arith.constant 1 : index
    %c0_55 = arith.constant 0 : index
    %41 = vector.load %arg4[%c0_53, %c1_54, %c0_55] : memref<1x2x8xf32, #tpu.memory_space<vmem>>, vector<1x1x8xf32>
    tpu.vector_store %arg4[%c0_53, %c1_54, %c0_55], %40 {strides = array<i32>} : memref<1x2x8xf32, #tpu.memory_space<vmem>>, vector<1x1x8xf32>,
    return
  }
  func.func @transform_0(%arg0: i32) -> (i32, i32, i32, i32) {
    %c0_i32 = arith.constant 0 : i32
    %c0_i32_0 = arith.constant 0 : i32
    %c0_i32_1 = arith.constant 0 : i32
    %c0_i32_2 = arith.constant 0 : i32
    return %arg0, %c0_i32, %c0_i32_0, %c0_i32_1 : i32, i32, i32, i32
  }
  func.func @transform_1(%arg0: i32) -> (i32, i32) {
    %c0_i32 = arith.constant 0 : i32
    %c0_i32_0 = arith.constant 0 : i32
    %c0_i32_1 = arith.constant 0 : i32
    return %c0_i32, %c0_i32_0 : i32, i32
  }
  func.func @transform_2(%arg0: i32) -> (i32, i32, i32, i32) {
    %c0_i32 = arith.constant 0 : i32
    %c0_i32_0 = arith.constant 0 : i32
    %c0_i32_1 = arith.constant 0 : i32
    %c0_i32_2 = arith.constant 0 : i32
    return %arg0, %c0_i32, %c0_i32_0, %c0_i32_1 : i32, i32, i32, i32
  }
  func.func @transform_3(%arg0: i32) -> (i32, i32, i32) {
    %c0_i32 = arith.constant 0 : i32
    %c0_i32_0 = arith.constant 0 : i32
    %c0_i32_1 = arith.constant 0 : i32
    return %arg0, %c0_i32, %c0_i32_0 : i32, i32, i32
  }
}

module attributes {stable_mosaic.version = 11 : i64} {
  func.func @kernel(%arg0: i32, %arg1: memref<1x8x8x8xf32, #tpu.memory_space<vmem>>, %arg2: memref<1x8xf32, #tpu.memory_space<vmem>>, %arg3: memref<1x8xf32, #tpu.memory_space<vmem>>, %arg4: memref<72x8xbf16, #tpu.memory_space<vmem>>, %arg5: memref<1x8x8x8xf32, #tpu.memory_space<vmem>>, %arg6: memref<1x2x8xf32, #tpu.memory_space<vmem>>, %arg7: memref<1x10x10x8xf32, #tpu.memory_space<vmem>>, %arg8: memref<64x72xf32, #tpu.memory_space<vmem>>) attributes {dimension_semantics = [#tpu.dimension_semantics<parallel>], iteration_bounds = array<i64: 2>, scalar_prefetch = 0 : i64, scratch_operands = 2 : i64, tpu.core_type = #tpu.core_type<tc>, window_params = [{transform_indices = @transform_0, window_bounds = array<i64: 1, 8, 8, 8>}, {pipeline_mode = #tpu.pipeline_mode<synchronous>, transform_indices = @transform_1, window_bounds = array<i64: 1, 8>}, {pipeline_mode = #tpu.pipeline_mode<synchronous>, transform_indices = @transform_2, window_bounds = array<i64: 1, 8>}, {pipeline_mode = #tpu.pipeline_mode<synchronous>, transform_indices = @transform_3, window_bounds = array<i64: 72, 8>}, {transform_indices = @transform_4, window_bounds = array<i64: 1, 8, 8, 8>}, {transform_indices = @transform_5, window_bounds = array<i64: 1, 2, 8>}]} {
    %c0 = arith.constant 0 : index
    %c0_0 = arith.constant 0 : index
    %c0_1 = arith.constant 0 : index
    %c0_2 = arith.constant 0 : index
    %0 = vector.load %arg1[%c0, %c0_0, %c0_1, %c0_2] : memref<1x8x8x8xf32, #tpu.memory_space<vmem>>, vector<1x8x8x8xf32>
    %c0_3 = arith.constant 0 : index
    %c0_4 = arith.constant 0 : index
    %1 = vector.load %arg2[%c0_3, %c0_4] : memref<1x8xf32, #tpu.memory_space<vmem>>, vector<1x8xf32>
    %2 = vector.shape_cast %1 : vector<1x8xf32> to vector<1x1x1x8xf32>
    %3 = vector.broadcast %2 : vector<1x1x1x8xf32> to vector<1x8x8x8xf32>
    %4 = arith.mulf %0, %3 : vector<1x8x8x8xf32>
    %c0_5 = arith.constant 0 : index
    %c0_6 = arith.constant 0 : index
    %5 = vector.load %arg3[%c0_5, %c0_6] : memref<1x8xf32, #tpu.memory_space<vmem>>, vector<1x8xf32>
    %6 = vector.shape_cast %5 : vector<1x8xf32> to vector<1x1x1x8xf32>
    %7 = vector.broadcast %6 : vector<1x1x1x8xf32> to vector<1x8x8x8xf32>
    %8 = arith.addf %4, %7 : vector<1x8x8x8xf32>
    %cst = arith.constant 0.000000e+00 : f32
    %9 = vector.broadcast %cst : f32 to vector<1x8x8x8xf32>
    %10 = arith.maximumf %8, %9 : vector<1x8x8x8xf32>
    %c0_7 = arith.constant 0 : index
    %c1 = arith.constant 1 : index
    %c1_8 = arith.constant 1 : index
    %c0_9 = arith.constant 0 : index
    %11 = vector.load %arg7[%c0_7, %c1, %c1_8, %c0_9] : memref<1x10x10x8xf32, #tpu.memory_space<vmem>>, vector<1x8x8x8xf32>
    tpu.vector_store %arg7[%c0_7, %c1, %c1_8, %c0_9], %10 {strides = array<i32>} : memref<1x10x10x8xf32, #tpu.memory_space<vmem>>, vector<1x8x8x8xf32>,
    %cst_10 = arith.constant 0.000000e+00 : f32
    %12 = vector.broadcast %cst_10 : f32 to vector<1x1x10x8xf32>
    %cst_11 = arith.constant 0.000000e+00 : f32
    %13 = vector.broadcast %cst_11 : f32 to vector<1x8x1x8xf32>
    %c0_12 = arith.constant 0 : index
    %c0_13 = arith.constant 0 : index
    %c0_14 = arith.constant 0 : index
    %c0_15 = arith.constant 0 : index
    %14 = vector.load %arg7[%c0_12, %c0_13, %c0_14, %c0_15] : memref<1x10x10x8xf32, #tpu.memory_space<vmem>>, vector<1x1x10x8xf32>
    tpu.vector_store %arg7[%c0_12, %c0_13, %c0_14, %c0_15], %12 {strides = array<i32>} : memref<1x10x10x8xf32, #tpu.memory_space<vmem>>, vector<1x1x10x8xf32>,
    %c0_16 = arith.constant 0 : index
    %c9 = arith.constant 9 : index
    %c0_17 = arith.constant 0 : index
    %c0_18 = arith.constant 0 : index
    %15 = vector.load %arg7[%c0_16, %c9, %c0_17, %c0_18] : memref<1x10x10x8xf32, #tpu.memory_space<vmem>>, vector<1x1x10x8xf32>
    tpu.vector_store %arg7[%c0_16, %c9, %c0_17, %c0_18], %12 {strides = array<i32>} : memref<1x10x10x8xf32, #tpu.memory_space<vmem>>, vector<1x1x10x8xf32>,
    %c0_19 = arith.constant 0 : index
    %c1_20 = arith.constant 1 : index
    %c0_21 = arith.constant 0 : index
    %c0_22 = arith.constant 0 : index
    %16 = vector.load %arg7[%c0_19, %c1_20, %c0_21, %c0_22] : memref<1x10x10x8xf32, #tpu.memory_space<vmem>>, vector<1x8x1x8xf32>
    tpu.vector_store %arg7[%c0_19, %c1_20, %c0_21, %c0_22], %13 {strides = array<i32>} : memref<1x10x10x8xf32, #tpu.memory_space<vmem>>, vector<1x8x1x8xf32>,
    %c0_23 = arith.constant 0 : index
    %c1_24 = arith.constant 1 : index
    %c9_25 = arith.constant 9 : index
    %c0_26 = arith.constant 0 : index
    %17 = vector.load %arg7[%c0_23, %c1_24, %c9_25, %c0_26] : memref<1x10x10x8xf32, #tpu.memory_space<vmem>>, vector<1x8x1x8xf32>
    tpu.vector_store %arg7[%c0_23, %c1_24, %c9_25, %c0_26], %13 {strides = array<i32>} : memref<1x10x10x8xf32, #tpu.memory_space<vmem>>, vector<1x8x1x8xf32>,
    %c0_27 = arith.constant 0 : index
    %c0_28 = arith.constant 0 : index
    %c0_29 = arith.constant 0 : index
    %c0_30 = arith.constant 0 : index
    %18 = vector.load %arg7[%c0_27, %c0_28, %c0_29, %c0_30] : memref<1x10x10x8xf32, #tpu.memory_space<vmem>>, vector<1x8x8x8xf32>
    %19 = vector.shape_cast %18 : vector<1x8x8x8xf32> to vector<64x8xf32>
    %c0_31 = arith.constant 0 : index
    %c0_32 = arith.constant 0 : index
    %20 = vector.load %arg8[%c0_31, %c0_32] : memref<64x72xf32, #tpu.memory_space<vmem>>, vector<64x8xf32>
    tpu.vector_store %arg8[%c0_31, %c0_32], %19 {strides = array<i32>} : memref<64x72xf32, #tpu.memory_space<vmem>>, vector<64x8xf32>,
    %c0_33 = arith.constant 0 : index
    %c0_34 = arith.constant 0 : index
    %c1_35 = arith.constant 1 : index
    %c0_36 = arith.constant 0 : index
    %21 = vector.load %arg7[%c0_33, %c0_34, %c1_35, %c0_36] : memref<1x10x10x8xf32, #tpu.memory_space<vmem>>, vector<1x8x8x8xf32>
    %22 = vector.shape_cast %21 : vector<1x8x8x8xf32> to vector<64x8xf32>
    %c0_37 = arith.constant 0 : index
    %c8 = arith.constant 8 : index
    %23 = vector.load %arg8[%c0_37, %c8] : memref<64x72xf32, #tpu.memory_space<vmem>>, vector<64x8xf32>
    tpu.vector_store %arg8[%c0_37, %c8], %22 {strides = array<i32>} : memref<64x72xf32, #tpu.memory_space<vmem>>, vector<64x8xf32>,
    %c0_38 = arith.constant 0 : index
    %c0_39 = arith.constant 0 : index
    %c2 = arith.constant 2 : index
    %c0_40 = arith.constant 0 : index
    %24 = vector.load %arg7[%c0_38, %c0_39, %c2, %c0_40] : memref<1x10x10x8xf32, #tpu.memory_space<vmem>>, vector<1x8x8x8xf32>
    %25 = vector.shape_cast %24 : vector<1x8x8x8xf32> to vector<64x8xf32>
    %c0_41 = arith.constant 0 : index
    %c16 = arith.constant 16 : index
    %26 = vector.load %arg8[%c0_41, %c16] : memref<64x72xf32, #tpu.memory_space<vmem>>, vector<64x8xf32>
    tpu.vector_store %arg8[%c0_41, %c16], %25 {strides = array<i32>} : memref<64x72xf32, #tpu.memory_space<vmem>>, vector<64x8xf32>,
    %c0_42 = arith.constant 0 : index
    %c1_43 = arith.constant 1 : index
    %c0_44 = arith.constant 0 : index
    %c0_45 = arith.constant 0 : index
    %27 = vector.load %arg7[%c0_42, %c1_43, %c0_44, %c0_45] : memref<1x10x10x8xf32, #tpu.memory_space<vmem>>, vector<1x8x8x8xf32>
    %28 = vector.shape_cast %27 : vector<1x8x8x8xf32> to vector<64x8xf32>
    %c0_46 = arith.constant 0 : index
    %c24 = arith.constant 24 : index
    %29 = vector.load %arg8[%c0_46, %c24] : memref<64x72xf32, #tpu.memory_space<vmem>>, vector<64x8xf32>
    tpu.vector_store %arg8[%c0_46, %c24], %28 {strides = array<i32>} : memref<64x72xf32, #tpu.memory_space<vmem>>, vector<64x8xf32>,
    %c0_47 = arith.constant 0 : index
    %c1_48 = arith.constant 1 : index
    %c1_49 = arith.constant 1 : index
    %c0_50 = arith.constant 0 : index
    %30 = vector.load %arg7[%c0_47, %c1_48, %c1_49, %c0_50] : memref<1x10x10x8xf32, #tpu.memory_space<vmem>>, vector<1x8x8x8xf32>
    %31 = vector.shape_cast %30 : vector<1x8x8x8xf32> to vector<64x8xf32>
    %c0_51 = arith.constant 0 : index
    %c32 = arith.constant 32 : index
    %32 = vector.load %arg8[%c0_51, %c32] : memref<64x72xf32, #tpu.memory_space<vmem>>, vector<64x8xf32>
    tpu.vector_store %arg8[%c0_51, %c32], %31 {strides = array<i32>} : memref<64x72xf32, #tpu.memory_space<vmem>>, vector<64x8xf32>,
    %c0_52 = arith.constant 0 : index
    %c1_53 = arith.constant 1 : index
    %c2_54 = arith.constant 2 : index
    %c0_55 = arith.constant 0 : index
    %33 = vector.load %arg7[%c0_52, %c1_53, %c2_54, %c0_55] : memref<1x10x10x8xf32, #tpu.memory_space<vmem>>, vector<1x8x8x8xf32>
    %34 = vector.shape_cast %33 : vector<1x8x8x8xf32> to vector<64x8xf32>
    %c0_56 = arith.constant 0 : index
    %c40 = arith.constant 40 : index
    %35 = vector.load %arg8[%c0_56, %c40] : memref<64x72xf32, #tpu.memory_space<vmem>>, vector<64x8xf32>
    tpu.vector_store %arg8[%c0_56, %c40], %34 {strides = array<i32>} : memref<64x72xf32, #tpu.memory_space<vmem>>, vector<64x8xf32>,
    %c0_57 = arith.constant 0 : index
    %c2_58 = arith.constant 2 : index
    %c0_59 = arith.constant 0 : index
    %c0_60 = arith.constant 0 : index
    %36 = vector.load %arg7[%c0_57, %c2_58, %c0_59, %c0_60] : memref<1x10x10x8xf32, #tpu.memory_space<vmem>>, vector<1x8x8x8xf32>
    %37 = vector.shape_cast %36 : vector<1x8x8x8xf32> to vector<64x8xf32>
    %c0_61 = arith.constant 0 : index
    %c48 = arith.constant 48 : index
    %38 = vector.load %arg8[%c0_61, %c48] : memref<64x72xf32, #tpu.memory_space<vmem>>, vector<64x8xf32>
    tpu.vector_store %arg8[%c0_61, %c48], %37 {strides = array<i32>} : memref<64x72xf32, #tpu.memory_space<vmem>>, vector<64x8xf32>,
    %c0_62 = arith.constant 0 : index
    %c2_63 = arith.constant 2 : index
    %c1_64 = arith.constant 1 : index
    %c0_65 = arith.constant 0 : index
    %39 = vector.load %arg7[%c0_62, %c2_63, %c1_64, %c0_65] : memref<1x10x10x8xf32, #tpu.memory_space<vmem>>, vector<1x8x8x8xf32>
    %40 = vector.shape_cast %39 : vector<1x8x8x8xf32> to vector<64x8xf32>
    %c0_66 = arith.constant 0 : index
    %c56 = arith.constant 56 : index
    %41 = vector.load %arg8[%c0_66, %c56] : memref<64x72xf32, #tpu.memory_space<vmem>>, vector<64x8xf32>
    tpu.vector_store %arg8[%c0_66, %c56], %40 {strides = array<i32>} : memref<64x72xf32, #tpu.memory_space<vmem>>, vector<64x8xf32>,
    %c0_67 = arith.constant 0 : index
    %c2_68 = arith.constant 2 : index
    %c2_69 = arith.constant 2 : index
    %c0_70 = arith.constant 0 : index
    %42 = vector.load %arg7[%c0_67, %c2_68, %c2_69, %c0_70] : memref<1x10x10x8xf32, #tpu.memory_space<vmem>>, vector<1x8x8x8xf32>
    %43 = vector.shape_cast %42 : vector<1x8x8x8xf32> to vector<64x8xf32>
    %c0_71 = arith.constant 0 : index
    %c64 = arith.constant 64 : index
    %44 = vector.load %arg8[%c0_71, %c64] : memref<64x72xf32, #tpu.memory_space<vmem>>, vector<64x8xf32>
    tpu.vector_store %arg8[%c0_71, %c64], %43 {strides = array<i32>} : memref<64x72xf32, #tpu.memory_space<vmem>>, vector<64x8xf32>,
    %c0_72 = arith.constant 0 : index
    %c0_73 = arith.constant 0 : index
    %45 = vector.load %arg8[%c0_72, %c0_73] : memref<64x72xf32, #tpu.memory_space<vmem>>, vector<64x72xf32>
    %46 = arith.truncf %45 : vector<64x72xf32> to vector<64x72xbf16>
    %c0_74 = arith.constant 0 : index
    %c0_75 = arith.constant 0 : index
    %47 = vector.load %arg4[%c0_74, %c0_75] : memref<72x8xbf16, #tpu.memory_space<vmem>>, vector<72x8xbf16>
    %cst_76 = arith.constant dense<0.000000e+00> : vector<64x8xf32>
    %48 = tpu.matmul %46, %47, %cst_76 {dimension_numbers = #tpu.dot_dimension_numbers<[1], [0], [0], [1], [0, 0, 1, 1], [], []>} : vector<64x72xbf16>, vector<72x8xbf16>, vector<64x8xf32> -> vector<64x8xf32>
    %49 = vector.shape_cast %48 : vector<64x8xf32> to vector<1x8x8x8xf32>
    %c0_77 = arith.constant 0 : index
    %c0_78 = arith.constant 0 : index
    %c0_79 = arith.constant 0 : index
    %c0_80 = arith.constant 0 : index
    %50 = vector.load %arg5[%c0_77, %c0_78, %c0_79, %c0_80] : memref<1x8x8x8xf32, #tpu.memory_space<vmem>>, vector<1x8x8x8xf32>
    tpu.vector_store %arg5[%c0_77, %c0_78, %c0_79, %c0_80], %49 {strides = array<i32>} : memref<1x8x8x8xf32, #tpu.memory_space<vmem>>, vector<1x8x8x8xf32>,
    %cst_81 = arith.constant dense<0.000000e+00> : vector<8xf32>
    %51 = vector.multi_reduction <add>, %48, %cst_81 [0] : vector<64x8xf32> to vector<8xf32>
    %52 = vector.shape_cast %51 : vector<8xf32> to vector<1x8xf32>
    %53 = vector.shape_cast %52 : vector<1x8xf32> to vector<1x1x8xf32>
    %c0_82 = arith.constant 0 : index
    %c0_83 = arith.constant 0 : index
    %c0_84 = arith.constant 0 : index
    %54 = vector.load %arg6[%c0_82, %c0_83, %c0_84] : memref<1x2x8xf32, #tpu.memory_space<vmem>>, vector<1x1x8xf32>
    tpu.vector_store %arg6[%c0_82, %c0_83, %c0_84], %53 {strides = array<i32>} : memref<1x2x8xf32, #tpu.memory_space<vmem>>, vector<1x1x8xf32>,
    %55 = arith.mulf %48, %48 : vector<64x8xf32>
    %cst_85 = arith.constant dense<0.000000e+00> : vector<8xf32>
    %56 = vector.multi_reduction <add>, %55, %cst_85 [0] : vector<64x8xf32> to vector<8xf32>
    %57 = vector.shape_cast %56 : vector<8xf32> to vector<1x8xf32>
    %58 = vector.shape_cast %57 : vector<1x8xf32> to vector<1x1x8xf32>
    %c0_86 = arith.constant 0 : index
    %c1_87 = arith.constant 1 : index
    %c0_88 = arith.constant 0 : index
    %59 = vector.load %arg6[%c0_86, %c1_87, %c0_88] : memref<1x2x8xf32, #tpu.memory_space<vmem>>, vector<1x1x8xf32>
    tpu.vector_store %arg6[%c0_86, %c1_87, %c0_88], %58 {strides = array<i32>} : memref<1x2x8xf32, #tpu.memory_space<vmem>>, vector<1x1x8xf32>,
    return
  }
  func.func @transform_0(%arg0: i32) -> (i32, i32, i32, i32) {
    %c0_i32 = arith.constant 0 : i32
    %c0_i32_0 = arith.constant 0 : i32
    %c0_i32_1 = arith.constant 0 : i32
    %c0_i32_2 = arith.constant 0 : i32
    return %arg0, %c0_i32, %c0_i32_0, %c0_i32_1 : i32, i32, i32, i32
  }
  func.func @transform_1(%arg0: i32) -> (i32, i32) {
    %c0_i32 = arith.constant 0 : i32
    %c0_i32_0 = arith.constant 0 : i32
    %c0_i32_1 = arith.constant 0 : i32
    return %c0_i32, %c0_i32_0 : i32, i32
  }
  func.func @transform_2(%arg0: i32) -> (i32, i32) {
    %c0_i32 = arith.constant 0 : i32
    %c0_i32_0 = arith.constant 0 : i32
    %c0_i32_1 = arith.constant 0 : i32
    return %c0_i32, %c0_i32_0 : i32, i32
  }
  func.func @transform_3(%arg0: i32) -> (i32, i32) {
    %c0_i32 = arith.constant 0 : i32
    %c0_i32_0 = arith.constant 0 : i32
    %c0_i32_1 = arith.constant 0 : i32
    return %c0_i32, %c0_i32_0 : i32, i32
  }
  func.func @transform_4(%arg0: i32) -> (i32, i32, i32, i32) {
    %c0_i32 = arith.constant 0 : i32
    %c0_i32_0 = arith.constant 0 : i32
    %c0_i32_1 = arith.constant 0 : i32
    %c0_i32_2 = arith.constant 0 : i32
    return %arg0, %c0_i32, %c0_i32_0, %c0_i32_1 : i32, i32, i32, i32
  }
  func.func @transform_5(%arg0: i32) -> (i32, i32, i32) {
    %c0_i32 = arith.constant 0 : i32
    %c0_i32_0 = arith.constant 0 : i32
    %c0_i32_1 = arith.constant 0 : i32
    return %arg0, %c0_i32, %c0_i32_0 : i32, i32, i32
  }
}

module attributes {stable_mosaic.version = 11 : i64} {
  func.func @kernel(%arg0: i32, %arg1: memref<1x8x8x8xf32, #tpu.memory_space<vmem>>, %arg2: memref<1x8xf32, #tpu.memory_space<vmem>>, %arg3: memref<1x8xf32, #tpu.memory_space<vmem>>, %arg4: memref<1x8x8x8xf32, #tpu.memory_space<vmem>>, %arg5: memref<1x8x8x8xf32, #tpu.memory_space<vmem>>) attributes {dimension_semantics = [#tpu.dimension_semantics<parallel>], iteration_bounds = array<i64: 2>, scalar_prefetch = 0 : i64, scratch_operands = 0 : i64, tpu.core_type = #tpu.core_type<tc>, window_params = [{transform_indices = @transform_0, window_bounds = array<i64: 1, 8, 8, 8>}, {pipeline_mode = #tpu.pipeline_mode<synchronous>, transform_indices = @transform_1, window_bounds = array<i64: 1, 8>}, {pipeline_mode = #tpu.pipeline_mode<synchronous>, transform_indices = @transform_2, window_bounds = array<i64: 1, 8>}, {transform_indices = @transform_3, window_bounds = array<i64: 1, 8, 8, 8>}, {transform_indices = @transform_4, window_bounds = array<i64: 1, 8, 8, 8>}]} {
    %c0 = arith.constant 0 : index
    %c0_0 = arith.constant 0 : index
    %c0_1 = arith.constant 0 : index
    %c0_2 = arith.constant 0 : index
    %0 = vector.load %arg1[%c0, %c0_0, %c0_1, %c0_2] : memref<1x8x8x8xf32, #tpu.memory_space<vmem>>, vector<1x8x8x8xf32>
    %c0_3 = arith.constant 0 : index
    %c0_4 = arith.constant 0 : index
    %1 = vector.load %arg2[%c0_3, %c0_4] : memref<1x8xf32, #tpu.memory_space<vmem>>, vector<1x8xf32>
    %2 = vector.shape_cast %1 : vector<1x8xf32> to vector<1x1x1x8xf32>
    %3 = vector.broadcast %2 : vector<1x1x1x8xf32> to vector<1x8x8x8xf32>
    %4 = arith.mulf %0, %3 : vector<1x8x8x8xf32>
    %c0_5 = arith.constant 0 : index
    %c0_6 = arith.constant 0 : index
    %5 = vector.load %arg3[%c0_5, %c0_6] : memref<1x8xf32, #tpu.memory_space<vmem>>, vector<1x8xf32>
    %6 = vector.shape_cast %5 : vector<1x8xf32> to vector<1x1x1x8xf32>
    %7 = vector.broadcast %6 : vector<1x1x1x8xf32> to vector<1x8x8x8xf32>
    %8 = arith.addf %4, %7 : vector<1x8x8x8xf32>
    %c0_7 = arith.constant 0 : index
    %c0_8 = arith.constant 0 : index
    %c0_9 = arith.constant 0 : index
    %c0_10 = arith.constant 0 : index
    %9 = vector.load %arg4[%c0_7, %c0_8, %c0_9, %c0_10] : memref<1x8x8x8xf32, #tpu.memory_space<vmem>>, vector<1x8x8x8xf32>
    %10 = arith.addf %8, %9 : vector<1x8x8x8xf32>
    %cst = arith.constant 0.000000e+00 : f32
    %11 = vector.broadcast %cst : f32 to vector<1x8x8x8xf32>
    %12 = arith.maximumf %10, %11 : vector<1x8x8x8xf32>
    %c0_11 = arith.constant 0 : index
    %c0_12 = arith.constant 0 : index
    %c0_13 = arith.constant 0 : index
    %c0_14 = arith.constant 0 : index
    %13 = vector.load %arg5[%c0_11, %c0_12, %c0_13, %c0_14] : memref<1x8x8x8xf32, #tpu.memory_space<vmem>>, vector<1x8x8x8xf32>
    tpu.vector_store %arg5[%c0_11, %c0_12, %c0_13, %c0_14], %12 {strides = array<i32>} : memref<1x8x8x8xf32, #tpu.memory_space<vmem>>, vector<1x8x8x8xf32>,
    return
  }
  func.func @transform_0(%arg0: i32) -> (i32, i32, i32, i32) {
    %c0_i32 = arith.constant 0 : i32
    %c0_i32_0 = arith.constant 0 : i32
    %c0_i32_1 = arith.constant 0 : i32
    %c0_i32_2 = arith.constant 0 : i32
    return %arg0, %c0_i32, %c0_i32_0, %c0_i32_1 : i32, i32, i32, i32
  }
  func.func @transform_1(%arg0: i32) -> (i32, i32) {
    %c0_i32 = arith.constant 0 : i32
    %c0_i32_0 = arith.constant 0 : i32
    %c0_i32_1 = arith.constant 0 : i32
    return %c0_i32, %c0_i32_0 : i32, i32
  }
  func.func @transform_2(%arg0: i32) -> (i32, i32) {
    %c0_i32 = arith.constant 0 : i32
    %c0_i32_0 = arith.constant 0 : i32
    %c0_i32_1 = arith.constant 0 : i32
    return %c0_i32, %c0_i32_0 : i32, i32
  }
  func.func @transform_3(%arg0: i32) -> (i32, i32, i32, i32) {
    %c0_i32 = arith.constant 0 : i32
    %c0_i32_0 = arith.constant 0 : i32
    %c0_i32_1 = arith.constant 0 : i32
    %c0_i32_2 = arith.constant 0 : i32
    return %arg0, %c0_i32, %c0_i32_0, %c0_i32_1 : i32, i32, i32, i32
  }
  func.func @transform_4(%arg0: i32) -> (i32, i32, i32, i32) {
    %c0_i32 = arith.constant 0 : i32
    %c0_i32_0 = arith.constant 0 : i32
    %c0_i32_1 = arith.constant 0 : i32
    %c0_i32_2 = arith.constant 0 : i32
    return %arg0, %c0_i32, %c0_i32_0, %c0_i32_1 : i32, i32, i32, i32
  }
}

</mosaic_0001>

<bundles_post_ra>
// kernel: res_basic_block.5
= control target key start
LH: loop header
LB: loop body
LE: loop exit
PB: predicated region body
PF: predicated region fallthrough
CT: control target
= control target key end

     0   :  { %s409_s15 = smov 0   ;;  %s458_s0 = inlined_call_operand.vmem [shape: f32[2,8,8,8], index: 0, kind: input, shape index: {}]   ;;  %s459_s1 = inlined_call_operand.vmem [shape: f32[1,8], index: 1, kind: input, shape index: {}]   ;;  %s460_s2 = inlined_call_operand.vmem [shape: f32[1,8], index: 2, kind: input, shape index: {}]   ;;  %s461_s3 = inlined_call_operand.vmem [shape: f32[2,8,8,8], index: 3, kind: input, shape index: {}]   ;;  %s462_s4 = inlined_call_operand.vmem [shape: f32[2,8,8,8], index: 4, kind: output, shape index: {}]  }
   0x1 LB: > { %s350_s16 = sadd.s32 4294967295, %s382_s15   ;;  %p354_p0 = scmp.ge.s32.totalorder %s382_s15, 1  ;;  %s382_s15 = sphi %s409_s15, %s14_s15  }
   0x2   : > { %p172_p1 = scmp.lt.s32.totalorder %s382_s15, 3 }
   0x4   : > { %p173_p2 = pnand %p354_p0, %p172_p1 }
   0x5   : > { %p203_p3 = scmp.lt.s32.totalorder (!%p173_p2), %s350_s16, 1 }
   0x6   : > { %176 = sbr.rel (%p173_p2) target bundleno = 31 (0x1f), region = 36 }
   0xb   : > { %s464_s16 = smov (!%p203_p3, %s350_s16), 1  ;;  %v374_v0 = vld [vmem:[%s459_s1] ss:$0 sm:$0xff]  ;;  %vm274_vm0 = vcmask 64512  }
   0xc   : > { %s420_s19 = sshll.u32 %s464_s16, 6  ;;  %v375_v1 = vld [vmem:[%s460_s2] ss:$0 sm:$0xff] }
   0xd   : > { %s207_s22 = scalar_lea.vmem %s458_s0, %s420_s19  ;;  %s430_s25 = scalar_lea.vmem %s461_s3, %s420_s19 }
   0xe   : > { %v218_v2 = vld [vmem:[%s207_s22] sm:$0xff]  ;;  %v219_v3 = vld [vmem:[%s207_s22 + $0x8] sm:$0xff]  ;;  %v220_v7 = vld [vmem:[%s207_s22 + $0x10] sm:$0xff]  ;;  %s217_s30 = scalar_lea.vmem %s462_s4, %s420_s19 }
   0xf   : > { %v230_v4 = vmul.f32 %v374_v0, %v218_v2  ;;  %v250_v5 = vld [vmem:[%s430_s25] sm:$0xff]  ;;  %v231_v6 = vmul.f32 %v374_v0, %v219_v3  ;;  %v251_v8 = vld [vmem:[%s430_s25 + $0x8] sm:$0xff]  ;;  %v232_v9 = vmul.f32 %v374_v0, %v220_v7  ;;  %v221_v10 = vld [vmem:[%s207_s22 + $0x18] sm:$0xff] }
  0x10   : > { %v222_v11 = vld [vmem:[%s207_s22 + $0x20] sm:$0xff]  ;;  %v252_v14 = vld [vmem:[%s430_s25 + $0x10] sm:$0xff]  ;;  %v233_v15 = vmul.f32 %v374_v0, %v221_v10  ;;  %v253_v16 = vld [vmem:[%s430_s25 + $0x18] sm:$0xff] }
  0x11   : > { %v242_v12 = vadd.f32 %v375_v1, %v230_v4  ;;  %v243_v13 = vadd.f32 %v375_v1, %v231_v6  ;;  %v234_v17 = vmul.f32 %v374_v0, %v222_v11  ;;  %v223_v18 = vld [vmem:[%s207_s22 + $0x28] sm:$0xff]  ;;  %v244_v19 = vadd.f32 %v375_v1, %v232_v9  ;;  %v254_v20 = vld [vmem:[%s430_s25 + $0x20] sm:$0xff]  ;;  %v224_v22 = vld [vmem:[%s207_s22 + $0x30] sm:$0xff] }
  0x12   : > { %v235_v21 = vmul.f32 %v374_v0, %v223_v18  ;;  %v225_v23 = vld [vmem:[%s207_s22 + $0x38] sm:$0xff]  ;;  %v245_v26 = vadd.f32 %v375_v1, %v233_v15  ;;  %v255_v28 = vld [vmem:[%s430_s25 + $0x28] sm:$0xff]  ;;  %v236_v31 = vmul.f32 %v374_v0, %v224_v22  ;;  %v256_v37 = vld [vmem:[%s430_s25 + $0x30] sm:$0xff] }
  0x13   : > { %v258_v24 = vadd.f32 %v250_v5, %v242_v12  ;;  %v259_v25 = vadd.f32 %v251_v8, %v243_v13  ;;  %v246_v27 = vadd.f32 %v375_v1, %v234_v17  ;;  %v260_v29 = vadd.f32 %v252_v14, %v244_v19  ;;  %v257_v38 = vld [vmem:[%s430_s25 + $0x38] sm:$0xff] }
  0x14   : > { %v247_v30 = vadd.f32 %v375_v1, %v235_v21  ;;  %v237_v32 = vmul.f32 %v374_v0, %v225_v23  ;;  %v261_v35 = vadd.f32 %v253_v16, %v245_v26  ;;  %v248_v41 = vadd.f32 %v375_v1, %v236_v31 }
  0x15   : > { %v266_v33 = vmax.f32 %v258_v24, 0.0  ;;  %v267_v34 = vmax.f32 %v259_v25, 0.0  ;;  %v262_v36 = vadd.f32 %v254_v20, %v246_v27  ;;  %v268_v39 = vmax.f32 %v260_v29, 0.0 }
  0x16   : > { %v263_v40 = vadd.f32 %v255_v28, %v247_v30  ;;  %v249_v42 = vadd.f32 %v375_v1, %v237_v32  ;;  %v269_v43 = vmax.f32 %v261_v35, 0.0  ;;  %v264_v46 = vadd.f32 %v256_v37, %v248_v41 }
  0x17   : > { %275 = vst.msk [vmem:[%s217_s30] sm:$0xff] %vm274_vm0, %v266_v33  ;;  %v270_v44 = vmax.f32 %v262_v36, 0.0 }
  0x18   : > { %276 = vst.msk [vmem:[%s217_s30 + $0x8] sm:$0xff] %vm274_vm0, %v267_v34  ;;  %v271_v45 = vmax.f32 %v263_v40, 0.0  ;;  %v265_v47 = vadd.f32 %v257_v38, %v249_v42  ;;  %v272_v48 = vmax.f32 %v264_v46, 0.0 }
  0x19   : > { %277 = vst.msk [vmem:[%s217_s30 + $0x10] sm:$0xff] %vm274_vm0, %v268_v39 }
  0x1a   : > { %278 = vst.msk [vmem:[%s217_s30 + $0x18] sm:$0xff] %vm274_vm0, %v269_v43  ;;  %v273_v49 = vmax.f32 %v265_v47, 0.0 }
  0x1b   : > { %279 = vst.msk [vmem:[%s217_s30 + $0x20] sm:$0xff] %vm274_vm0, %v270_v44 }
  0x1c   : > { %280 = vst.msk [vmem:[%s217_s30 + $0x28] sm:$0xff] %vm274_vm0, %v271_v45 }
  0x1d   : > { %281 = vst.msk [vmem:[%s217_s30 + $0x30] sm:$0xff] %vm274_vm0, %v272_v48 }
  0x1e   : > { %282 = vst.msk [vmem:[%s217_s30 + $0x38] sm:$0xff] %vm274_vm0, %v273_v49 }
  0x1f PF: > { %s14_s15 = sadd.s32 1, %s382_s15  }
  0x20   : > { %p11_p4 = scmp.ge.s32.totalorder %s14_s15, 4  }
  0x22   :  { %13 = sbr.rel (!%p11_p4) target bundleno = 1 (0x1), region = 69 }

// kernel: res_basic_block.3
= control target key start
LH: loop header
LB: loop body
LE: loop exit
PB: predicated region body
PF: predicated region fallthrough
CT: control target
= control target key end

     0   :  { %s967_s12 = smov 0   ;;  %s1272_s0 = inlined_call_operand.vmem [shape: f32[2,36,9,4], index: 0, kind: input, shape index: {}]   ;;  %s1273_s1 = inlined_call_operand.vmem [shape: bf16[36,8], index: 1, kind: input, shape index: {}]   ;;  %s1274_s2 = inlined_call_operand.vmem [shape: f32[2,8,8,8], index: 2, kind: output, shape index: {0}]   ;;  %s1275_s3 = inlined_call_operand.vmem [shape: f32[2,2,8], index: 3, kind: output, shape index: {1}]  }
   0x1 LB: > { %s823_s13 = sadd.s32 4294967295, %s937_s12   ;;  %p827_p0 = scmp.ge.s32.totalorder %s937_s12, 1  ;;  %s937_s12 = sphi %s967_s12, %s14_s12  }
   0x2   : > { %p140_p1 = scmp.lt.s32.totalorder %s937_s12, 3 }
   0x4   : > { %p141_p2 = pnand %p827_p0, %p140_p1 }
   0x5   : > { %p168_p3 = scmp.lt.s32.totalorder (!%p141_p2), %s823_s13, 1  ;;  %s939_s18 = smov (!%p141_p2), 8  }
   0x6   : > { %144 = sbr.rel (%p141_p2) target bundleno = 467 (0x1d3), region = 28  ;;  %s940_s19 = smov (!%p141_p2), 4  }
   0x7   : > { %s941_s20 = smov (!%p141_p2), 12   ;;  %s942_s21 = smov (!%p141_p2), 16  }
   0x8   : > { %s943_s22 = smov (!%p141_p2), 20   ;;  %s944_s23 = smov (!%p141_p2), 24  }
   0x9   : > { %s945_s24 = smov (!%p141_p2), 28   ;;  %s946_s25 = smov (!%p141_p2), 32  }
   0xb   : > { %s1277_s13 = smov (!%p168_p3, %s823_s13), 1  ;;  %vm191_vm0 = vcmask 31744   ;;  %vm241_vm1 = vcmask 64544   ;;  %vm290_vm2 = vcmask 97344   ;;  %vm340_vm3 = vcmask 130144  }
   0xc   : > { %s914_s14 = smul.u32 576, %s1277_s13  ;;  %vm390_vm4 = vcmask 162944   ;;  %vm439_vm5 = vcmask 195744   ;;  %vm489_vm6 = vcmask 228544   ;;  %vm642_vm7 = vcmask 1041408   ;;  %s902_s5 = sshll.u32 %s1277_s13, 6 }
   0xd   : > { %vm539_vm8 = vcmask 261344   ;;  %vm588_vm9 = vcmask 294144   ;;  %vm629_vm10 = vcmask 293888   ;;  %s1231_s8 = scalar_lea.vmem %s1274_s2, %s902_s5  ;;  %vm675_vm11 = vcmask 64512   ;;  %s831_s9 = sshll.u32 %s1277_s13, 1 }
   0xe   : > { %s981_s17 = scalar_lea.vmem %s1272_s0, %s914_s14  ;;  %s181_s14 = scalar_lea.vmem %s1275_s3, %s831_s9  ;;  %vm705_vm12 = vcmask 57344  }
   0xf   : > { %v250_v0 = vld [vmem:[%s981_s17 + $0x1] sm:$0xff]  ;;  %v832_v1 = vld [vmem:[%s981_s17 + $0x90] sm:$0xff] }
  0x10   : > { %266 = vrot.lane.b32.xlu1 %v250_v0, %s939_s18  ;;  %217 = vrot.lane.b32.xlu0 %v832_v1, %s940_s19  ;;  %v988_v2 = vld [vmem:[%s981_s17 + $0xd0] sm:$0xff]  ;;  %v833_v4 = vld [vmem:[%s981_s17 + $0xa0] sm:$0xff] }
  0x11   : > { %225 = vrot.lane.b32.xlu2 %v988_v2, %s940_s19  ;;  %v993_v3 = vld [vmem:[%s981_s17 + $0x11] sm:$0xff]  ;;  %v997_v5 = vld [vmem:[%s981_s17 + $0xe0] sm:$0xff] }
  0x12   : > { %v841_v6 = vld [vmem:[%s981_s17 + $0x130] sm:$0xff]  ;;  %v840_v7 = vld [vmem:[%s981_s17 + $0x120] sm:$0xff] }
  0x13   : > { %v1007_v8 = vld [vmem:[%s981_s17 + $0x41] sm:$0xff]  ;;  %v848_v9 = vld [vmem:[%s981_s17 + $0x1b0] sm:$0xff] }
  0x14   : > { %v1015_v10 = vld [vmem:[%s981_s17 + $0x51] sm:$0xff]  ;;  %v849_v11 = vld [vmem:[%s981_s17 + $0x1c0] sm:$0xff] }
  0x15   : > { %v1023_v12 = vld [vmem:[%s981_s17 + $0xc0] sm:$0xff]  ;;  %v834_v13 = vld [vmem:[%s981_s17 + $0xb0] sm:$0xff] }
  0x16   : > { %v844_v14 = vld [vmem:[%s981_s17 + $0x160] sm:$0xff]  ;;  %v845_v16 = vld [vmem:[%s981_s17 + $0x170] sm:$0xff] }
  0x17   : > { %v856_v15 = vld [vmem:[%s981_s17 + $0x121] sm:$0xff]  ;;  %v857_v17 = vld [vmem:[%s981_s17 + $0x131] sm:$0xff] }
  0x18   : > { %268 = vrot.lane.b32.xlu1 %v993_v3, %s939_s18  ;;  %219 = vrot.lane.b32.xlu0 %v833_v4, %s940_s19  ;;  %v1038_v18 = vld [vmem:[%s981_s17 + $0x31] sm:$0xff]  ;;  %v252_v19 = vld [vmem:[%s981_s17 + $0x21] sm:$0xff] }
  0x19   : > { %227 = vrot.lane.b32.xlu2 %v997_v5, %s940_s19  ;;  %v852_v20 = vld [vmem:[%s981_s17 + $0x1f0] sm:$0xff]  ;;  %v853_v22 = vld [vmem:[%s981_s17 + $0x200] sm:$0xff] }
  0x1a   : > { %v864_v21 = vld [vmem:[%s981_s17 + $0x10] sm:$0xff]  ;;  %v865_v23 = vld [vmem:[%s981_s17 + $0x20] sm:$0xff] }
  0x1b   : > { %v1053_v24 = vld [vmem:[%s981_s17 + $0x100] sm:$0xff]  ;;  %v1056_v25 = vld [vmem:[%s981_s17 + $0xf0] sm:$0xff]  ;;  %193 = vst.msk [vmem:[#allocation2 + $0x8] sm:$0xff] %vm191_vm0, %v864_v21 }
  0x1c   : > { %v842_v26 = vld [vmem:[%s981_s17 + $0x140] sm:$0xff]  ;;  %v843_v28 = vld [vmem:[%s981_s17 + $0x150] sm:$0xff]  ;;  %194 = vst.msk [vmem:[#allocation2 + $0x10] sm:$0xff] %vm191_vm0, %v865_v23 }
  0x1d   : > { %v860_v27 = vld [vmem:[%s981_s17 + $0x161] sm:$0xff]  ;;  %v861_v29 = vld [vmem:[%s981_s17 + $0x171] sm:$0xff] }
  0x1e   : > { %v1071_v30 = vld [vmem:[%s981_s17 + $0x61] sm:$0xff]  ;;  %v868_v33 = vld [vmem:[%s981_s17 + $0x50] sm:$0xff] }
  0x1f   : > { %v183_v31 = vld [vmem:[%s981_s17] sm:$0xff]  ;;  %197 = vst.msk [vmem:[#allocation2 + $0x28] sm:$0xff] %vm191_vm0, %v868_v33  ;;  %v850_v34 = vld [vmem:[%s981_s17 + $0x1d0] sm:$0xff] }
  0x20   : > { %318 = vrot.lane.b32.xlu1 %v841_v6, %s941_s20  ;;  %316 = vrot.lane.b32.xlu0 %v840_v7, %s941_s20  ;;  %v187_v32 = vld [vmem:[%s981_s17 + $0x40] sm:$0xff]  ;;  %192 = vst.msk [vmem:[#allocation2] sm:$0xff] %vm191_vm0, %v183_v31  ;;  %v1085_v35 = vld [vmem:[%s981_s17 + $0x71] sm:$0xff] }
  0x21   : > { %274 = vrot.lane.b32.xlu2 %v1007_v8, %s939_s18  ;;  %196 = vst.msk [vmem:[#allocation2 + $0x20] sm:$0xff] %vm191_vm0, %v187_v32  ;;  %v869_v36 = vld [vmem:[%s981_s17 + $0x60] sm:$0xff]  ;;  %v866_v39 = vld [vmem:[%s981_s17 + $0x30] sm:$0xff] }
  0x22   : > { %v851_v37 = vld [vmem:[%s981_s17 + $0x1e0] sm:$0xff]  ;;  %198 = vst.msk [vmem:[#allocation2 + $0x30] sm:$0xff] %vm191_vm0, %v869_v36  ;;  %v847_v42 = vld [vmem:[%s981_s17 + $0x190] sm:$0xff] }
  0x23   : > { %195 = vst.msk [vmem:[#allocation2 + $0x18] sm:$0xff] %vm191_vm0, %v866_v39  ;;  %v846_v41 = vld [vmem:[%s981_s17 + $0x180] sm:$0xff]  ;;  %v859_v44 = vld [vmem:[%s981_s17 + $0x151] sm:$0xff] }
  0x24   : > { %v858_v45 = vld [vmem:[%s981_s17 + $0x141] sm:$0xff]  ;;  %v854_v49 = vld [vmem:[%s981_s17 + $0x210] sm:$0xff] }
  0x25   : > { %v855_v50 = vld [vmem:[%s981_s17 + $0x220] sm:$0xff]  ;;  %v870_v58 = vld [vmem:[%s981_s17 + $0x70] sm:$0xff] }
  0x26   : > { %v862_v57 = vld [vmem:[%s981_s17 + $0x181] sm:$0xff]  ;;  %v863_v59 = vld [vmem:[%s981_s17 + $0x191] sm:$0xff]  ;;  %199 = vst.msk [vmem:[#allocation2 + $0x38] sm:$0xff] %vm191_vm0, %v870_v58 }
  0x27   : > { %v879_v6 = vld [vmem:[%s981_s17 + $0x110] sm:$0xff] }
  0x28   : > { %366 = vrot.lane.b32.xlu1 %v848_v9, %s942_s21  ;;  %276 = vrot.lane.b32.xlu0 %v1015_v10, %s939_s18 }
  0x29   : > { %368 = vrot.lane.b32.xlu2 %v849_v11, %s942_s21 }
  0x30   : > { %223 = vrot.lane.b32.xlu1 %v1023_v12, %s940_s19  ;;  %221 = vrot.lane.b32.xlu0 %v834_v13, %s940_s19 }
  0x31   : > { %324 = vrot.lane.b32.xlu2 %v844_v14, %s941_s20 }
  0x38   : > { %415 = vrot.lane.b32.xlu1 %v856_v15, %s943_s22  ;;  %326 = vrot.lane.b32.xlu0 %v845_v16, %s941_s20 }
  0x39   : > { %417 = vrot.lane.b32.xlu2 %v857_v17, %s943_s22  ;;  %v613_v17 = vld [vmem:[%s1273_s1 + $0x10] sm:$0x3] }
  0x40   : > { %272 = vrot.lane.b32.xlu1 %v1038_v18, %s939_s18  ;;  %270 = vrot.lane.b32.xlu0 %v252_v19, %s939_s18 }
  0x41   : > { %374 = vrot.lane.b32.xlu2 %v852_v20, %s942_s21 }
  0x48   : > { %465 = vrot.lane.b32.xlu1 %v864_v21, %s944_s23  ;;  %376 = vrot.lane.b32.xlu0 %v853_v22, %s942_s21 }
  0x49   : > { %467 = vrot.lane.b32.xlu2 %v865_v23, %s944_s23 }
  0x50   : > { %231 = vrot.lane.b32.xlu1 %v1053_v24, %s940_s19  ;;  %229 = vrot.lane.b32.xlu0 %v1056_v25, %s940_s19 }
  0x51   : > { %320 = vrot.lane.b32.xlu2 %v842_v26, %s941_s20 }
  0x58   : > { %423 = vrot.lane.b32.xlu1 %v860_v27, %s943_s22  ;;  %322 = vrot.lane.b32.xlu0 %v843_v28, %s941_s20 }
  0x59   : > { %425 = vrot.lane.b32.xlu2 %v861_v29, %s943_s22 }
  0x60   : > { %517 = vrot.lane.b32.xlu1 %v834_v13, %s945_s24  ;;  %515 = vrot.lane.b32.xlu0 %v833_v4, %s945_s24 }
  0x61   : > { %278 = vrot.lane.b32.xlu2 %v1071_v30, %s939_s18 }
  0x68   : > { %370 = vrot.lane.b32.xlu1 %v850_v34, %s942_s21  ;;  %280 = vrot.lane.b32.xlu0 %v1085_v35, %s939_s18 }
  0x69   : > { %372 = vrot.lane.b32.xlu2 %v851_v37, %s942_s21 }
  0x6b   : > { %v226_v38 = vpop.permute.xlu2 %225 }
  0x6c   : > { %246 = vst.msk [vmem:[#allocation2 + $0x20] sm:$0xff] %vm241_vm1, %v226_v38 }
  0x70   : > { %475 = vrot.lane.b32.xlu1 %v869_v36, %s944_s23  ;;  %473 = vrot.lane.b32.xlu0 %v868_v33, %s944_s23 }
  0x71   : > { %564 = vrot.lane.b32.xlu2 %v993_v3, %s946_s25  ;;  %v871_v3 = vld [vmem:[%s981_s17 + $0x80] sm:$0xff] }
  0x73   : > { %v228_v40 = vpop.permute.xlu2 %227 }
  0x74   : > { %247 = vst.msk [vmem:[#allocation2 + $0x28] sm:$0xff] %vm241_vm1, %v228_v40 }
  0x78   : > { %328 = vrot.lane.b32.xlu1 %v846_v41, %s941_s20  ;;  %566 = vrot.lane.b32.xlu0 %v252_v19, %s946_s25 }
  0x79   : > { %330 = vrot.lane.b32.xlu2 %v847_v42, %s941_s20 }
  0x7b   : > { %v275_v43 = vpop.permute.xlu2 %274 }
  0x7c   : > { %295 = vst.msk [vmem:[#allocation2 + $0x20] sm:$0xff] %vm290_vm2, %v275_v43 }
  0x80   : > { %421 = vrot.lane.b32.xlu1 %v859_v44, %s943_s22  ;;  %419 = vrot.lane.b32.xlu0 %v858_v45, %s943_s22 }
  0x81   : > { %523 = vrot.lane.b32.xlu2 %v997_v5, %s945_s24 }
  0x82   : > { %v267_v46 = vpop.permute.xlu1 %266  ;;  %v218_v47 = vpop.permute.xlu0 %217 }
  0x83   : > { %242 = vst.msk [vmem:[#allocation2] sm:$0xff] %vm241_vm1, %v218_v47  ;;  %v369_v48 = vpop.permute.xlu2 %368 }
  0x84   : > { %291 = vst.msk [vmem:[#allocation2] sm:$0xff] %vm290_vm2, %v267_v46 }
  0x88   : > { %378 = vrot.lane.b32.xlu1 %v854_v49, %s942_s21  ;;  %525 = vrot.lane.b32.xlu0 %v1056_v25, %s945_s24  ;;  %v903_v25 = vld [vmem:[%s1273_s1] sm:$0xff] }
  0x89   : > { %380 = vrot.lane.b32.xlu2 %v855_v50, %s942_s21 }
  0x8a   : > { %v269_v51 = vpop.permute.xlu1 %268  ;;  %v220_v52 = vpop.permute.xlu0 %219 }
  0x8b   : > { %243 = vst.msk [vmem:[#allocation2 + $0x8] sm:$0xff] %vm241_vm1, %v220_v52  ;;  %v325_v53 = vpop.permute.xlu2 %324 }
  0x8c   : > { %292 = vst.msk [vmem:[#allocation2 + $0x8] sm:$0xff] %vm290_vm2, %v269_v51 }
  0x8d   : > { %345 = vst.msk [vmem:[#allocation2 + $0x20] sm:$0xff] %vm340_vm3, %v325_v53 }
  0x90   : > { %471 = vrot.lane.b32.xlu1 %v187_v32, %s944_s23  ;;  %469 = vrot.lane.b32.xlu0 %v866_v39, %s944_s23 }
  0x91   : > { %572 = vrot.lane.b32.xlu2 %v1015_v10, %s946_s25  ;;  %v887_v10 = vld [vmem:[%s981_s17 + $0x81] sm:$0xff] }
  0x92   : > { %v319_v54 = vpop.permute.xlu1 %318  ;;  %v317_v55 = vpop.permute.xlu0 %316 }
  0x93   : > { %342 = vst.msk [vmem:[#allocation2 + $0x8] sm:$0xff] %vm340_vm3, %v319_v54  ;;  %v418_v56 = vpop.permute.xlu2 %417 }
  0x94   : > { %341 = vst.msk [vmem:[#allocation2] sm:$0xff] %vm340_vm3, %v317_v55 }
  0x95   : > { %392 = vst.msk [vmem:[#allocation2 + $0x8] sm:$0xff] %vm390_vm4, %v369_v48 }
  0x96   : > { %441 = vst.msk [vmem:[#allocation2 + $0x8] sm:$0xff] %vm439_vm5, %v418_v56 }
  0x98   : > { %427 = vrot.lane.b32.xlu1 %v862_v57, %s943_s22  ;;  %574 = vrot.lane.b32.xlu0 %v1071_v30, %s946_s25 }
  0x99   : > { %429 = vrot.lane.b32.xlu2 %v863_v59, %s943_s22 }
  0x9a   : > { %v367_v60 = vpop.permute.xlu1 %366  ;;  %v277_v61 = vpop.permute.xlu0 %276 }
  0x9b   : > { %391 = vst.msk [vmem:[#allocation2] sm:$0xff] %vm390_vm4, %v367_v60  ;;  %v375_v62 = vpop.permute.xlu2 %374 }
  0x9c   : > { %296 = vst.msk [vmem:[#allocation2 + $0x28] sm:$0xff] %vm290_vm2, %v277_v61 }
  0x9d   : > { %395 = vst.msk [vmem:[#allocation2 + $0x20] sm:$0xff] %vm390_vm4, %v375_v62 }
  0xa0   : > { %521 = vrot.lane.b32.xlu1 %v988_v2, %s945_s24  ;;  %519 = vrot.lane.b32.xlu0 %v1023_v12, %s945_s24 }
  0xa1   : > { %477 = vrot.lane.b32.xlu2 %v870_v58, %s944_s23 }
  0xa2   : > { %v224_v63 = vpop.permute.xlu1 %223  ;;  %v222_v0 = vpop.permute.xlu0 %221 }
  0xa3   : > { %245 = vst.msk [vmem:[#allocation2 + $0x18] sm:$0xff] %vm241_vm1, %v224_v63  ;;  %v468_v1 = vpop.permute.xlu2 %467 }
  0xa4   : > { %244 = vst.msk [vmem:[#allocation2 + $0x10] sm:$0xff] %vm241_vm1, %v222_v0 }
  0xa5   : > { %491 = vst.msk [vmem:[#allocation2 + $0x8] sm:$0xff] %vm489_vm6, %v468_v1 }
  0xa8   : > { %568 = vrot.lane.b32.xlu1 %v1038_v18, %s946_s25  ;;  %479 = vrot.lane.b32.xlu0 %v871_v3, %s944_s23  ;;  %v623_v18 = vunpack.c.l.b16 %v613_v17 }
  0xa9   : > { %570 = vrot.lane.b32.xlu2 %v1007_v8, %s946_s25 }
  0xaa   : > { %v416_v2 = vpop.permute.xlu1 %415  ;;  %v327_v4 = vpop.permute.xlu0 %326  ;;  %v626_v19 = vpack.c.b16 %v623_v18, %v623_v18 }
  0xab   : > { %440 = vst.msk [vmem:[#allocation2] sm:$0xff] %vm439_vm5, %v416_v2  ;;  %v321_v5 = vpop.permute.xlu2 %320 }
  0xac   : > { %346 = vst.msk [vmem:[#allocation2 + $0x28] sm:$0xff] %vm340_vm3, %v327_v4  ;;  %v644_v20 = vsel %vm642_vm7, %v626_v19, 0 }
  0xad   : > { %651 = vmatpush.bf16.msra.mxu0 %v644_v20  ;;  %906 = vmatpush.bf16.msra.mxu2 %v644_v20 }
  0xae   : > { %905 = vmatpush.bf16.msra.mxu1 %v644_v20  ;;  %907 = vmatpush.bf16.msra.mxu3 %v644_v20 }
  0xb0   : > { %527 = vrot.lane.b32.xlu0 %v1053_v24, %s945_s24  ;;  %529 = vrot.lane.b32.xlu1 %v879_v6, %s945_s24  ;;  %v904_v24 = vld [vmem:[%s1273_s1 + $0x8] sm:$0xff] }
  0xb1   : > { %576 = vrot.lane.b32.xlu2 %v1085_v35, %s946_s25  ;;  %652 = vmatpush.bf16.msra.mxu0 %v904_v24 }
  0xb2   : > { %v273_v7 = vpop.permute.xlu1 %272  ;;  %v271_v9 = vpop.permute.xlu0 %270  ;;  %909 = vmatpush.bf16.msra.mxu2 %v904_v24  ;;  %908 = vmatpush.bf16.msra.mxu1 %v904_v24 }
  0xb3   : > { %294 = vst.msk [vmem:[#allocation2 + $0x18] sm:$0xff] %vm290_vm2, %v273_v7  ;;  %v426_v8 = vpop.permute.xlu2 %425  ;;  %910 = vmatpush.bf16.msra.mxu3 %v904_v24 }
  0xb4   : > { %293 = vst.msk [vmem:[#allocation2 + $0x10] sm:$0xff] %vm290_vm2, %v271_v9 }
  0xb5   : > { %343 = vst.msk [vmem:[#allocation2 + $0x10] sm:$0xff] %vm340_vm3, %v321_v5  ;;  %653 = vmatpush.bf16.msra.mxu0 %v903_v25 }
  0xb6   : > { %912 = vmatpush.bf16.msra.mxu2 %v903_v25  ;;  %911 = vmatpush.bf16.msra.mxu1 %v903_v25 }
  0xb7   : > { %913 = vmatpush.bf16.msra.mxu3 %v903_v25 }
  0xb8   : > { %578 = vrot.lane.b32.xlu0 %v887_v10, %s946_s25 }
  0xba   : > { %v466_v11 = vpop.permute.xlu1 %465  ;;  %v377_v12 = vpop.permute.xlu0 %376 }
  0xbb   : > { %490 = vst.msk [vmem:[#allocation2] sm:$0xff] %vm489_vm6, %v466_v11  ;;  %v279_v13 = vpop.permute.xlu2 %278 }
  0xbc   : > { %396 = vst.msk [vmem:[#allocation2 + $0x28] sm:$0xff] %vm390_vm4, %v377_v12 }
  0xbd   : > { %445 = vst.msk [vmem:[#allocation2 + $0x28] sm:$0xff] %vm439_vm5, %v426_v8 }
  0xc2   : > { %v232_v14 = vpop.permute.xlu1 %231  ;;  %v230_v15 = vpop.permute.xlu0 %229 }
  0xc3   : > { %249 = vst.msk [vmem:[#allocation2 + $0x38] sm:$0xff] %vm241_vm1, %v232_v14  ;;  %v373_v16 = vpop.permute.xlu2 %372 }
  0xc4   : > { %248 = vst.msk [vmem:[#allocation2 + $0x30] sm:$0xff] %vm241_vm1, %v230_v15 }
  0xc5   : > { %297 = vst.msk [vmem:[#allocation2 + $0x30] sm:$0xff] %vm290_vm2, %v279_v13 }
  0xca   : > { %v424_v21 = vpop.permute.xlu1 %423  ;;  %v323_v22 = vpop.permute.xlu0 %322 }
  0xcb   : > { %444 = vst.msk [vmem:[#allocation2 + $0x20] sm:$0xff] %vm439_vm5, %v424_v21  ;;  %v565_v23 = vpop.permute.xlu2 %564 }
  0xcc   : > { %344 = vst.msk [vmem:[#allocation2 + $0x18] sm:$0xff] %vm340_vm3, %v323_v22 }
  0xcd   : > { %394 = vst.msk [vmem:[#allocation2 + $0x18] sm:$0xff] %vm390_vm4, %v373_v16 }
  0xd2   : > { %v518_v26 = vpop.permute.xlu1 %517  ;;  %v516_v27 = vpop.permute.xlu0 %515 }
  0xd3   : > { %541 = vst.msk [vmem:[#allocation2 + $0x8] sm:$0xff] %vm539_vm8, %v518_v26  ;;  %v331_v28 = vpop.permute.xlu2 %330 }
  0xd4   : > { %540 = vst.msk [vmem:[#allocation2] sm:$0xff] %vm539_vm8, %v516_v27 }
  0xd5   : > { %589 = vst.msk [vmem:[#allocation2] sm:$0xff] %vm588_vm9, %v565_v23 }
  0xda   : > { %v371_v29 = vpop.permute.xlu1 %370  ;;  %v281_v30 = vpop.permute.xlu0 %280 }
  0xdb   : > { %393 = vst.msk [vmem:[#allocation2 + $0x10] sm:$0xff] %vm390_vm4, %v371_v29  ;;  %v524_v31 = vpop.permute.xlu2 %523 }
  0xdc   : > { %298 = vst.msk [vmem:[#allocation2 + $0x38] sm:$0xff] %vm290_vm2, %v281_v30  ;;  %v597_v38 = vld [vmem:[#allocation2] sm:$0xff] }
  0xdd   : > { %348 = vst.msk [vmem:[#allocation2 + $0x38] sm:$0xff] %vm340_vm3, %v331_v28 }
  0xe2   : > { %v476_v32 = vpop.permute.xlu1 %475  ;;  %v474_v33 = vpop.permute.xlu0 %473 }
  0xe3   : > { %495 = vst.msk [vmem:[#allocation2 + $0x28] sm:$0xff] %vm489_vm6, %v476_v32  ;;  %v381_v34 = vpop.permute.xlu2 %380 }
  0xe4   : > { %494 = vst.msk [vmem:[#allocation2 + $0x20] sm:$0xff] %vm489_vm6, %v474_v33 }
  0xe5   : > { %544 = vst.msk [vmem:[#allocation2 + $0x20] sm:$0xff] %vm539_vm8, %v524_v31 }
  0xe6   : > { %398 = vst.msk [vmem:[#allocation2 + $0x38] sm:$0xff] %vm390_vm4, %v381_v34 }
  0xea   : > { %v329_v35 = vpop.permute.xlu1 %328  ;;  %v567_v36 = vpop.permute.xlu0 %566 }
  0xeb   : > { %347 = vst.msk [vmem:[#allocation2 + $0x30] sm:$0xff] %vm340_vm3, %v329_v35  ;;  %v573_v37 = vpop.permute.xlu2 %572 }
  0xec   : > { %590 = vst.msk [vmem:[#allocation2 + $0x8] sm:$0xff] %vm588_vm9, %v567_v36 }
  0xed   : > { %593 = vst.msk [vmem:[#allocation2 + $0x20] sm:$0xff] %vm588_vm9, %v573_v37 }
  0xf2   : > { %v422_v39 = vpop.permute.xlu1 %421  ;;  %v420_v40 = vpop.permute.xlu0 %419 }
  0xf3   : > { %443 = vst.msk [vmem:[#allocation2 + $0x18] sm:$0xff] %vm439_vm5, %v422_v39  ;;  %v598_v41 = vld [vmem:[#allocation2 + $0x8] sm:$0xff]  ;;  %v430_v43 = vpop.permute.xlu2 %429 }
  0xf4   : > { %442 = vst.msk [vmem:[#allocation2 + $0x10] sm:$0xff] %vm439_vm5, %v420_v40  ;;  %v605_v42 = vpack.c.bf16 %v598_v41, %v597_v38  ;;  %v601_v51 = vld [vmem:[#allocation2 + $0x20] sm:$0xff] }
  0xf5   : > { %447 = vst.msk [vmem:[#allocation2 + $0x38] sm:$0xff] %vm439_vm5, %v430_v43 }
  0xf6   : > { %896 = vmatmul.msk.bf16.vlgmr.msra.gmra.mxu0 %vm629_vm10, %v605_v42 }
  0xfa   : > { %v379_v44 = vpop.permute.xlu1 %378  ;;  %v526_v45 = vpop.permute.xlu0 %525 }
  0xfb   : > { %397 = vst.msk [vmem:[#allocation2 + $0x30] sm:$0xff] %vm390_vm4, %v379_v44  ;;  %v478_v48 = vpop.permute.xlu2 %477 }
  0xfc   : > { %545 = vst.msk [vmem:[#allocation2 + $0x28] sm:$0xff] %vm539_vm8, %v526_v45 }
 0x102   : > { %v472_v46 = vpop.permute.xlu1 %471  ;;  %v470_v47 = vpop.permute.xlu0 %469 }
 0x103   : > { %493 = vst.msk [vmem:[#allocation2 + $0x18] sm:$0xff] %vm489_vm6, %v472_v46  ;;  %v571_v52 = vpop.permute.xlu2 %570 }
 0x104   : > { %492 = vst.msk [vmem:[#allocation2 + $0x10] sm:$0xff] %vm489_vm6, %v470_v47 }
 0x10a   : > { %v428_v49 = vpop.permute.xlu1 %427  ;;  %v575_v50 = vpop.permute.xlu0 %574 }
 0x10b   : > { %446 = vst.msk [vmem:[#allocation2 + $0x30] sm:$0xff] %vm439_vm5, %v428_v49  ;;  %v577_v60 = vpop.permute.xlu2 %576 }
 0x10c   : > { %594 = vst.msk [vmem:[#allocation2 + $0x28] sm:$0xff] %vm588_vm9, %v575_v50 }
 0x10d   : > { %496 = vst.msk [vmem:[#allocation2 + $0x30] sm:$0xff] %vm489_vm6, %v478_v48 }
 0x112   : > { %v522_v53 = vpop.permute.xlu1 %521  ;;  %v520_v54 = vpop.permute.xlu0 %519 }
 0x113   : > { %543 = vst.msk [vmem:[#allocation2 + $0x18] sm:$0xff] %vm539_vm8, %v522_v53  ;;  %v602_v55 = vld [vmem:[#allocation2 + $0x28] sm:$0xff] }
 0x114   : > { %542 = vst.msk [vmem:[#allocation2 + $0x10] sm:$0xff] %vm539_vm8, %v520_v54  ;;  %v607_v56 = vpack.c.bf16 %v602_v55, %v601_v51 }
 0x115   : > { %592 = vst.msk [vmem:[#allocation2 + $0x18] sm:$0xff] %vm588_vm9, %v571_v52 }
 0x116   : > { %898 = vmatmul.msk.bf16.vlgmr.msra.gmra.mxu2 %vm629_vm10, %v607_v56 }
 0x11a   : > { %v569_v57 = vpop.permute.xlu1 %568  ;;  %v480_v58 = vpop.permute.xlu0 %479 }
 0x11b   : > { %591 = vst.msk [vmem:[#allocation2 + $0x10] sm:$0xff] %vm588_vm9, %v569_v57 }
 0x11c   : > { %497 = vst.msk [vmem:[#allocation2 + $0x38] sm:$0xff] %vm489_vm6, %v480_v58  ;;  %v600_v59 = vld [vmem:[#allocation2 + $0x18] sm:$0xff] }
 0x122   : > { %v528_v61 = vpop.permute.xlu0 %527  ;;  %v599_v62 = vld [vmem:[#allocation2 + $0x10] sm:$0xff]  ;;  %v530_v63 = vpop.permute.xlu1 %529 }
 0x123   : > { %546 = vst.msk [vmem:[#allocation2 + $0x30] sm:$0xff] %vm539_vm8, %v528_v61  ;;  %v606_v0 = vpack.c.bf16 %v600_v59, %v599_v62 }
 0x124   : > { %547 = vst.msk [vmem:[#allocation2 + $0x38] sm:$0xff] %vm539_vm8, %v530_v63 }
 0x125   : > { %897 = vmatmul.msk.bf16.vlgmr.msra.gmra.mxu1 %vm629_vm10, %v606_v0  ;;  %595 = vst.msk [vmem:[#allocation2 + $0x30] sm:$0xff] %vm588_vm9, %v577_v60 }
 0x12a   : > { %v579_v1 = vpop.permute.xlu0 %578 }
 0x12b   : > { %596 = vst.msk [vmem:[#allocation2 + $0x38] sm:$0xff] %vm588_vm9, %v579_v1 }
 0x12c   : > { %v603_v3 = vld [vmem:[#allocation2 + $0x30] sm:$0xff] }
 0x132   : > { %v604_v2 = vld [vmem:[#allocation2 + $0x38] sm:$0xff] }
 0x133   : > { %v608_v4 = vpack.c.bf16 %v604_v2, %v603_v3 }
 0x135   : > { %899 = vmatmul.msk.bf16.vlgmr.msra.gmra.mxu3 %vm629_vm10, %v608_v4 }
 0x173   : > { %v655_v5 = vpop.f32.mrf.mxu0 }
 0x174   : > { %676 = vst.msk [vmem:[%s1231_s8] sm:$0xff] %vm675_vm11, %v655_v5  ;;  %v707_v12 = vmul.f32 %v655_v5, %v655_v5  ;;  %v684_v15 = vsel %vm675_vm11, %v655_v5, 0.0 }
 0x176   : > { %v715_v20 = vsel %vm675_vm11, %v707_v12, 0.0 }
 0x17b   : > { %v657_v6 = vpop.f32.mrf.mxu0 }
 0x17c   : > { %677 = vst.msk [vmem:[%s1231_s8 + $0x8] sm:$0xff] %vm675_vm11, %v657_v6  ;;  %v708_v11 = vmul.f32 %v657_v6, %v657_v6  ;;  %v685_v13 = vsel %vm675_vm11, %v657_v6, 0.0 }
 0x17d   : > { %v686_v19 = vadd.f32 %v685_v13, %v684_v15 }
 0x17e   : > { %v716_v16 = vsel %vm675_vm11, %v708_v11, 0.0 }
 0x17f   : > { %v717_v23 = vadd.f32 %v716_v16, %v715_v20 }
 0x199   : > { %v665_v7 = vpop.f32.mrf.mxu2 }
 0x19a   : > { %680 = vst.msk [vmem:[%s1231_s8 + $0x20] sm:$0xff] %vm675_vm11, %v665_v7  ;;  %v711_v28 = vmul.f32 %v665_v7, %v665_v7  ;;  %v691_v31 = vsel %vm675_vm11, %v665_v7, 0.0 }
 0x19c   : > { %v722_v33 = vsel %vm675_vm11, %v711_v28, 0.0 }
 0x1a1   : > { %v667_v9 = vpop.f32.mrf.mxu2 }
 0x1a2   : > { %681 = vst.msk [vmem:[%s1231_s8 + $0x28] sm:$0xff] %vm675_vm11, %v667_v9  ;;  %v660_v8 = vpop.f32.mrf.mxu1  ;;  %v712_v34 = vmul.f32 %v667_v9, %v667_v9  ;;  %v693_v37 = vsel %vm675_vm11, %v667_v9, 0.0 }
 0x1a3   : > { %678 = vst.msk [vmem:[%s1231_s8 + $0x10] sm:$0xff] %vm675_vm11, %v660_v8  ;;  %v709_v14 = vmul.f32 %v660_v8, %v660_v8  ;;  %v687_v17 = vsel %vm675_vm11, %v660_v8, 0.0 }
 0x1a4   : > { %v688_v24 = vadd.f32 %v687_v17, %v686_v19  ;;  %v724_v40 = vsel %vm675_vm11, %v712_v34, 0.0 }
 0x1a5   : > { %v718_v21 = vsel %vm675_vm11, %v709_v14, 0.0 }
 0x1a6   : > { %v719_v26 = vadd.f32 %v718_v21, %v717_v23 }
 0x1aa   : > { %v662_v10 = vpop.f32.mrf.mxu1 }
 0x1ab   : > { %679 = vst.msk [vmem:[%s1231_s8 + $0x18] sm:$0xff] %vm675_vm11, %v662_v10  ;;  %v710_v18 = vmul.f32 %v662_v10, %v662_v10  ;;  %v689_v22 = vsel %vm675_vm11, %v662_v10, 0.0 }
 0x1ac   : > { %v690_v27 = vadd.f32 %v689_v22, %v688_v24 }
 0x1ad   : > { %v720_v25 = vsel %vm675_vm11, %v710_v18, 0.0 }
 0x1ae   : > { %v721_v29 = vadd.f32 %v720_v25, %v719_v26  ;;  %v692_v32 = vadd.f32 %v691_v31, %v690_v27 }
 0x1b0   : > { %v723_v36 = vadd.f32 %v722_v33, %v721_v29  ;;  %v694_v39 = vadd.f32 %v693_v37, %v692_v32 }
 0x1b2   : > { %v725_v43 = vadd.f32 %v724_v40, %v723_v36 }
 0x1b8   : > { %v670_v30 = vpop.f32.mrf.mxu3 }
 0x1b9   : > { %682 = vst.msk [vmem:[%s1231_s8 + $0x30] sm:$0xff] %vm675_vm11, %v670_v30  ;;  %v713_v35 = vmul.f32 %v670_v30, %v670_v30  ;;  %v695_v38 = vsel %vm675_vm11, %v670_v30, 0.0 }
 0x1ba   : > { %v696_v42 = vadd.f32 %v695_v38, %v694_v39 }
 0x1bb   : > { %v726_v41 = vsel %vm675_vm11, %v713_v35, 0.0 }
 0x1bc   : > { %v727_v47 = vadd.f32 %v726_v41, %v725_v43 }
 0x1c0   : > { %v672_v44 = vpop.f32.mrf.mxu3 }
 0x1c1   : > { %683 = vst.msk [vmem:[%s1231_s8 + $0x38] sm:$0xff] %vm675_vm11, %v672_v44  ;;  %v697_v45 = vsel %vm675_vm11, %v672_v44, 0.0  ;;  %v714_v46 = vmul.f32 %v672_v44, %v672_v44 }
 0x1c2   : > { %v698_v48 = vadd.f32 %v697_v45, %v696_v42 }
 0x1c3   : > { %v728_v49 = vsel %vm675_vm11, %v714_v46, 0.0 }
 0x1c4   : > { %v699_v50 = vrot.slane %v698_v48, 4  ;;  %v729_v51 = vadd.f32 %v728_v49, %v727_v47 }
 0x1c6   : > { %v700_v52 = vadd.f32 %v699_v50, %v698_v48  ;;  %v730_v53 = vrot.slane %v729_v51, 4 }
 0x1c8   : > { %v701_v54 = vrot.slane %v700_v52, 2  ;;  %v731_v55 = vadd.f32 %v730_v53, %v729_v51 }
 0x1ca   : > { %v702_v56 = vadd.f32 %v701_v54, %v700_v52  ;;  %v732_v57 = vrot.slane %v731_v55, 2 }
 0x1cc   : > { %v703_v58 = vrot.slane %v702_v56, 1  ;;  %v733_v59 = vadd.f32 %v732_v57, %v731_v55 }
 0x1ce   : > { %v704_v60 = vadd.f32 %v703_v58, %v702_v56  ;;  %v734_v61 = vrot.slane %v733_v59, 1 }
 0x1d0   : > { %706 = vst.msk [vmem:[%s181_s14] sm:$0x1] %vm705_vm12, %v704_v60  ;;  %v735_v62 = vadd.f32 %v734_v61, %v733_v59 }
 0x1d2   : > { %736 = vst.msk [vmem:[%s181_s14 + $0x1] sm:$0x1] %vm705_vm12, %v735_v62 }
 0x1d3 PF: > { %s14_s12 = sadd.s32 1, %s937_s12  }
 0x1d4   : > { %p11_p4 = scmp.ge.s32.totalorder %s14_s12, 4  }
 0x1d6   :  { %13 = sbr.rel (!%p11_p4) target bundleno = 1 (0x1), region = 75 }

// kernel: res_basic_block.4
= control target key start
LH: loop header
LB: loop body
LE: loop exit
PB: predicated region body
PF: predicated region fallthrough
CT: control target
= control target key end

     0   :  { %s1078_s18 = smov 0   ;;  %s1389_s0 = inlined_call_operand.vmem [shape: f32[2,8,8,8], index: 0, kind: input, shape index: {}]   ;;  %s1390_s1 = inlined_call_operand.vmem [shape: f32[1,8], index: 1, kind: input, shape index: {}]   ;;  %s1391_s2 = inlined_call_operand.vmem [shape: f32[1,8], index: 2, kind: input, shape index: {}]   ;;  %s1392_s3 = inlined_call_operand.vmem [shape: bf16[72,8], index: 3, kind: input, shape index: {}]   ;;  %s1393_s4 = inlined_call_operand.vmem [shape: f32[2,8,8,8], index: 4, kind: output, shape index: {0}]   ;;  %s1394_s5 = inlined_call_operand.vmem [shape: f32[2,2,8], index: 5, kind: output, shape index: {1}]  }
   0x1 LB: > { %s959_s19 = sadd.s32 4294967295, %s1037_s18   ;;  %p963_p0 = scmp.ge.s32.totalorder %s1037_s18, 1  ;;  %s1037_s18 = sphi %s1078_s18, %s16_s18  }
   0x2   : > { %p190_p1 = scmp.lt.s32.totalorder %s1037_s18, 3 }
   0x4   : > { %p191_p2 = pnand %p963_p0, %p190_p1 }
   0x5   : > { %p222_p3 = scmp.lt.s32.totalorder (!%p191_p2), %s959_s19, 1  ;;  %s1040_s28 = smov (!%p191_p2), 16  }
   0x6   : > { %194 = sbr.rel (%p191_p2) target bundleno = 477 (0x1dd), region = 36  ;;  %s1041_s29 = smov (!%p191_p2), 8  }
   0x7   : > { %s1042_s30 = smov (!%p191_p2), 24   ;;  %s1043_s6 = smov (!%p191_p2), 32  }
   0x8   : > { %s1044_s7 = smov (!%p191_p2), 40   ;;  %s1045_s8 = smov (!%p191_p2), 48  }
   0x9   : > { %s1046_s9 = smov (!%p191_p2), 56   ;;  %s1047_s10 = smov (!%p191_p2), 64  }
   0xb   : > { %vm278_vm0 = vcmask 64512   ;;  %vm288_vm1 = vcmask 58368   ;;  %v1039_v0 = vmov 0.0   ;;  %vm293_vm2 = vcmask 57344   ;;  %s1396_s19 = smov (!%p222_p3, %s959_s19), 1 }
   0xc   : > { %287 = vst.msk [vmem:[#allocation2] sm:$0xff] %vm278_vm0, %v1039_v0  ;;  %v1093_v1 = vld [vmem:[%s1390_s1] ss:$0 sm:$0xff]  ;;  %s991_s22 = sshll.u32 %s1396_s19, 6  ;;  %vm366_vm3 = vcmask 130112   ;;  %vm415_vm4 = vcmask 195712  }
   0xd   : > { %289 = vst.msk [vmem:[#allocation2 + $0x8] sm:$0x3] %vm288_vm1, %v1039_v0  ;;  %s1102_s25 = scalar_lea.vmem %s1389_s0, %s991_s22  ;;  %v1107_v2 = vld [vmem:[%s1391_s2] ss:$0 sm:$0xff]  ;;  %vm464_vm5 = vcmask 261312   ;;  %vm513_vm6 = vcmask 326912   ;;  %s1346_s26 = scalar_lea.vmem %s1393_s4, %s991_s22 }
   0xe   : > { %291 = vst.msk [vmem:[#allocation2 + $0x90] sm:$0xff] %vm278_vm0, %v1039_v0  ;;  %v237_v3 = vld [vmem:[%s1102_s25] sm:$0xff]  ;;  %v238_v4 = vld [vmem:[%s1102_s25 + $0x8] sm:$0xff]  ;;  %v240_v6 = vld [vmem:[%s1102_s25 + $0x18] sm:$0xff]  ;;  %vm562_vm7 = vcmask 392512   ;;  %vm612_vm8 = vcmask 458112  }
   0xf   : > { %292 = vst.msk [vmem:[#allocation2 + $0x98] sm:$0x3] %vm288_vm1, %v1039_v0  ;;  %v249_v5 = vmul.f32 %v1093_v1, %v237_v3  ;;  %v241_v9 = vld [vmem:[%s1102_s25 + $0x20] sm:$0xff]  ;;  %v250_v11 = vmul.f32 %v1093_v1, %v238_v4  ;;  %v239_v12 = vld [vmem:[%s1102_s25 + $0x10] sm:$0xff]  ;;  %v252_v13 = vmul.f32 %v1093_v1, %v240_v6  ;;  %v242_v14 = vld [vmem:[%s1102_s25 + $0x28] sm:$0xff]  ;;  %vm780_vm9 = vcmask 1043456  }
  0x10   : > { %302 = vst.msk [vmem:[#allocation2 + $0x19] sm:$0x1] %vm293_vm2, %v1039_v0  ;;  %v253_v16 = vmul.f32 %v1093_v1, %v241_v9  ;;  %v251_v17 = vmul.f32 %v1093_v1, %v239_v12  ;;  %v254_v19 = vmul.f32 %v1093_v1, %v242_v14  ;;  %v243_v35 = vld [vmem:[%s1102_s25 + $0x30] sm:$0xff]  ;;  %v244_v53 = vld [vmem:[%s1102_s25 + $0x38] sm:$0xff]  ;;  %vm661_vm10 = vcmask 523712   ;;  %s968_s22 = sshll.u32 %s1396_s19, 1 }
  0x11   : > { %294 = vst.msk [vmem:[#allocation2 + $0x10] sm:$0x1] %vm293_vm2, %v1039_v0  ;;  %v261_v10 = vadd.f32 %v1107_v2, %v249_v5  ;;  %v262_v18 = vadd.f32 %v1107_v2, %v250_v11  ;;  %v264_v20 = vadd.f32 %v1107_v2, %v252_v13  ;;  %v255_v37 = vmul.f32 %v1093_v1, %v243_v35 }
  0x12   : > { %295 = vst.msk [vmem:[#allocation2 + $0x20] sm:$0x1] %vm293_vm2, %v1039_v0  ;;  %v265_v21 = vadd.f32 %v1107_v2, %v253_v16  ;;  %v263_v22 = vadd.f32 %v1107_v2, %v251_v17  ;;  %v266_v24 = vadd.f32 %v1107_v2, %v254_v19  ;;  %v256_v54 = vmul.f32 %v1093_v1, %v244_v53 }
  0x13   : > { %296 = vst.msk [vmem:[#allocation2 + $0x30] sm:$0x1] %vm293_vm2, %v1039_v0  ;;  %v269_v15 = vmax.f32 %v261_v10, 0.0  ;;  %v270_v23 = vmax.f32 %v262_v18, 0.0  ;;  %v272_v25 = vmax.f32 %v264_v20, 0.0  ;;  %v267_v39 = vadd.f32 %v1107_v2, %v255_v37  ;;  %v310_v52 = vld [vmem:[#allocation2] sm:$0xff] }
  0x14   : > { %v375_v7 = vld [vmem:[#allocation2 + $0x2] sm:$0xff]  ;;  %297 = vst.msk [vmem:[#allocation2 + $0x40] sm:$0x1] %vm293_vm2, %v1039_v0  ;;  %v273_v26 = vmax.f32 %v265_v21, 0.0  ;;  %v271_v29 = vmax.f32 %v263_v22, 0.0  ;;  %v274_v30 = vmax.f32 %v266_v24, 0.0  ;;  %v268_v55 = vadd.f32 %v1107_v2, %v256_v54 }
  0x15   : > { %v326_v8 = vld [vmem:[#allocation2 + $0x1] sm:$0xff]  ;;  %391 = vrot.lane.b32.xlu1 %v375_v7, %s1040_s28  ;;  %298 = vst.msk [vmem:[#allocation2 + $0x50] sm:$0x1] %vm293_vm2, %v1039_v0  ;;  %v275_v41 = vmax.f32 %v267_v39, 0.0  ;;  %v579_v13 = vld [vmem:[#allocation2 + $0x90] sm:$0xff]  ;;  %vm710_vm11 = vcmask 589312  }
  0x16   : > { %342 = vrot.lane.b32.xlu0 %v326_v8, %s1041_s29  ;;  %299 = vst.msk [vmem:[#allocation2 + $0x60] sm:$0x1] %vm293_vm2, %v1039_v0  ;;  %v276_v58 = vmax.f32 %v268_v55, 0.0  ;;  %v628_v18 = vld [vmem:[#allocation2 + $0x91] sm:$0xff]  ;;  %v993_v39 = vld [vmem:[%s1392_s3] sm:$0xff]  ;;  %vm767_vm12 = vcmask 588800  }
  0x17   : > { %300 = vst.msk [vmem:[#allocation2 + $0x70] sm:$0x1] %vm293_vm2, %v1039_v0  ;;  %v677_v22 = vld [vmem:[#allocation2 + $0x92] sm:$0xff] }
  0x18   : > { %301 = vst.msk [vmem:[#allocation2 + $0x80] sm:$0x1] %vm293_vm2, %v1039_v0 }
  0x19   : > { %279 = vst.msk [vmem:[#allocation2 + $0x11] sm:$0xff] %vm278_vm0, %v269_v15 }
  0x1a   : > { %303 = vst.msk [vmem:[#allocation2 + $0x29] sm:$0x1] %vm293_vm2, %v1039_v0 }
  0x1b   : > { %304 = vst.msk [vmem:[#allocation2 + $0x39] sm:$0x1] %vm293_vm2, %v1039_v0 }
  0x1c   : > { %305 = vst.msk [vmem:[#allocation2 + $0x49] sm:$0x1] %vm293_vm2, %v1039_v0 }
  0x1d   : > { %306 = vst.msk [vmem:[#allocation2 + $0x59] sm:$0x1] %vm293_vm2, %v1039_v0 }
  0x1e   : > { %307 = vst.msk [vmem:[#allocation2 + $0x69] sm:$0x1] %vm293_vm2, %v1039_v0 }
  0x1f   : > { %308 = vst.msk [vmem:[#allocation2 + $0x79] sm:$0x1] %vm293_vm2, %v1039_v0 }
  0x20   : > { %v376_v27 = vld [vmem:[#allocation2 + $0x12] sm:$0xff]  ;;  %309 = vst.msk [vmem:[#allocation2 + $0x89] sm:$0x1] %vm293_vm2, %v1039_v0 }
  0x21   : > { %v327_v28 = vld [vmem:[#allocation2 + $0x11] sm:$0xff]  ;;  %393 = vrot.lane.b32.xlu1 %v376_v27, %s1040_s28  ;;  %280 = vst.msk [vmem:[#allocation2 + $0x21] sm:$0xff] %vm278_vm0, %v270_v23 }
  0x22   : > { %344 = vrot.lane.b32.xlu0 %v327_v28, %s1041_s29  ;;  %282 = vst.msk [vmem:[#allocation2 + $0x41] sm:$0xff] %vm278_vm0, %v272_v25  ;;  %v424_v31 = vld [vmem:[#allocation2 + $0x10] sm:$0xff] }
  0x23   : > { %283 = vst.msk [vmem:[#allocation2 + $0x51] sm:$0xff] %vm278_vm0, %v273_v26  ;;  %v739_v26 = vld [vmem:[%s1392_s3 + $0x20] sm:$0xf] }
  0x24   : > { %281 = vst.msk [vmem:[#allocation2 + $0x31] sm:$0xff] %vm278_vm0, %v271_v29 }
  0x25   : > { %284 = vst.msk [vmem:[#allocation2 + $0x61] sm:$0xff] %vm278_vm0, %v274_v30 }
  0x26   : > { %319 = vst.msk [vmem:[#allocation3 + $0x8] sm:$0xff] %vm278_vm0, %v424_v31 }
  0x27   : > { %285 = vst.msk [vmem:[#allocation2 + $0x71] sm:$0xff] %vm278_vm0, %v275_v41 }
  0x28   : > { %v425_v32 = vld [vmem:[#allocation2 + $0x20] sm:$0xff]  ;;  %318 = vst.msk [vmem:[#allocation3] sm:$0xff] %vm278_vm0, %v310_v52 }
  0x29   : > { %442 = vrot.lane.b32.xlu1 %v425_v32, %s1042_s30  ;;  %v1155_v33 = vld [vmem:[#allocation2 + $0x41] sm:$0xff]  ;;  %320 = vst.msk [vmem:[#allocation3 + $0x10] sm:$0xff] %vm278_vm0, %v425_v32 }
  0x2a   : > { %440 = vrot.lane.b32.xlu0 %v424_v31, %s1042_s30  ;;  %350 = vrot.lane.b32.xlu2 %v1155_v33, %s1041_s29  ;;  %v1160_v34 = vld [vmem:[#allocation2 + $0x50] sm:$0xff]  ;;  %v328_v43 = vld [vmem:[#allocation2 + $0x21] sm:$0xff]  ;;  %286 = vst.msk [vmem:[#allocation2 + $0x81] sm:$0xff] %vm278_vm0, %v276_v58 }
  0x2b   : > { %323 = vst.msk [vmem:[#allocation3 + $0x28] sm:$0xff] %vm278_vm0, %v1160_v34  ;;  %v1167_v38 = vld [vmem:[#allocation2 + $0x52] sm:$0xff]  ;;  %v1178_v44 = vld [vmem:[#allocation2 + $0x42] sm:$0xff] }
  0x2c   : > { %v429_v36 = vld [vmem:[#allocation2 + $0x60] sm:$0xff]  ;;  %v1170_v40 = vld [vmem:[#allocation2 + $0x51] sm:$0xff] }
  0x2d   : > { %324 = vst.msk [vmem:[#allocation3 + $0x30] sm:$0xff] %vm278_vm0, %v429_v36  ;;  %v329_v42 = vld [vmem:[#allocation2 + $0x31] sm:$0xff]  ;;  %v1184_v45 = vld [vmem:[#allocation2 + $0x40] sm:$0xff] }
  0x2e   : > { %v573_v46 = vld [vmem:[#allocation2 + $0x30] sm:$0xff]  ;;  %322 = vst.msk [vmem:[#allocation3 + $0x20] sm:$0xff] %vm278_vm0, %v1184_v45  ;;  %v377_v48 = vld [vmem:[#allocation2 + $0x22] sm:$0xff] }
  0x2f   : > { %321 = vst.msk [vmem:[#allocation3 + $0x18] sm:$0xff] %vm278_vm0, %v573_v46  ;;  %v378_v47 = vld [vmem:[#allocation2 + $0x32] sm:$0xff]  ;;  %v478_v49 = vld [vmem:[#allocation2 + $0x61] sm:$0xff] }
  0x30   : > { %v577_v50 = vld [vmem:[#allocation2 + $0x70] sm:$0xff]  ;;  %v527_v57 = vld [vmem:[#allocation2 + $0x62] sm:$0xff] }
  0x31   : > { %489 = vrot.lane.b32.xlu1 %v327_v28, %s1043_s6  ;;  %325 = vst.msk [vmem:[#allocation3 + $0x38] sm:$0xff] %vm278_vm0, %v577_v50  ;;  %v333_v51 = vld [vmem:[#allocation2 + $0x71] sm:$0xff]  ;;  %v431_v63 = vld [vmem:[#allocation2 + $0x80] sm:$0xff] }
  0x32   : > { %401 = vrot.lane.b32.xlu0 %v1167_v38, %s1040_s28  ;;  %352 = vrot.lane.b32.xlu2 %v1170_v40, %s1041_s29  ;;  %v382_v56 = vld [vmem:[#allocation2 + $0x72] sm:$0xff]  ;;  %v480_v6 = vld [vmem:[#allocation2 + $0x81] sm:$0xff] }
  0x33   : > { %v529_v14 = vld [vmem:[#allocation2 + $0x82] sm:$0xff] }
  0x39   : > { %348 = vrot.lane.b32.xlu1 %v329_v42, %s1041_s29 }
  0x3a   : > { %346 = vrot.lane.b32.xlu0 %v328_v43, %s1041_s29  ;;  %399 = vrot.lane.b32.xlu2 %v1178_v44, %s1040_s28 }
  0x41   : > { %538 = vrot.lane.b32.xlu1 %v376_v27, %s1044_s7  ;;  %v757_v27 = vunpack.c.l.b16 %v739_v26 }
  0x42   : > { %450 = vrot.lane.b32.xlu0 %v429_v36, %s1042_s30  ;;  %491 = vrot.lane.b32.xlu2 %v328_v43, %s1043_s6 }
  0x43   : > { %v762_v28 = vpack.c.b16 %v757_v27, %v757_v27 }
  0x45   : > { %v782_v29 = vsel %vm780_vm9, %v762_v28, 0 }
  0x46   : > { %787 = vmatpush.bf16.msra.mxu0 %v782_v29  ;;  %998 = vmatpush.bf16.msra.mxu2 %v782_v29 }
  0x47   : > { %997 = vmatpush.bf16.msra.mxu1 %v782_v29  ;;  %999 = vmatpush.bf16.msra.mxu3 %v782_v29 }
  0x49   : > { %397 = vrot.lane.b32.xlu1 %v378_v47, %s1040_s28 }
  0x4a   : > { %395 = vrot.lane.b32.xlu0 %v377_v48, %s1040_s28  ;;  %448 = vrot.lane.b32.xlu2 %v1160_v34, %s1042_s30 }
  0x51   : > { %588 = vrot.lane.b32.xlu1 %v425_v32, %s1045_s8 }
  0x52   : > { %499 = vrot.lane.b32.xlu0 %v478_v49, %s1043_s6  ;;  %540 = vrot.lane.b32.xlu2 %v377_v48, %s1044_s7 }
  0x59   : > { %356 = vrot.lane.b32.xlu1 %v333_v51, %s1041_s29 }
  0x5a   : > { %354 = vrot.lane.b32.xlu0 %v478_v49, %s1041_s29  ;;  %497 = vrot.lane.b32.xlu2 %v1170_v40, %s1043_s6  ;;  %s235_s29 = scalar_lea.vmem %s1394_s5, %s968_s22 }
  0x61   : > { %546 = vrot.lane.b32.xlu1 %v1167_v38, %s1044_s7 }
  0x62   : > { %446 = vrot.lane.b32.xlu0 %v1184_v45, %s1042_s30  ;;  %590 = vrot.lane.b32.xlu2 %v573_v46, %s1045_s8 }
  0x69   : > { %639 = vrot.lane.b32.xlu1 %v329_v42, %s1046_s9 }
  0x6a   : > { %637 = vrot.lane.b32.xlu0 %v328_v43, %s1046_s9  ;;  %444 = vrot.lane.b32.xlu2 %v573_v46, %s1042_s30 }
  0x71   : > { %493 = vrot.lane.b32.xlu1 %v329_v42, %s1043_s6 }
  0x72   : > { %405 = vrot.lane.b32.xlu0 %v382_v56, %s1040_s28  ;;  %548 = vrot.lane.b32.xlu2 %v527_v57, %s1044_s7 }
  0x79   : > { %598 = vrot.lane.b32.xlu1 %v577_v50, %s1045_s8 }
  0x7a   : > { %596 = vrot.lane.b32.xlu0 %v429_v36, %s1045_s8  ;;  %403 = vrot.lane.b32.xlu2 %v527_v57, %s1040_s28 }
  0x81   : > { %452 = vrot.lane.b32.xlu1 %v577_v50, %s1042_s30 }
  0x82   : > { %688 = vrot.lane.b32.xlu0 %v378_v47, %s1047_s10  ;;  %495 = vrot.lane.b32.xlu2 %v1155_v33, %s1043_s6 }
  0x84   : > { %v351_v59 = vpop.permute.xlu2 %350 }
  0x85   : > { %371 = vst.msk [vmem:[#allocation3 + $0x20] sm:$0xff] %vm366_vm3, %v351_v59 }
  0x87   : > { %v392_v61 = vpop.permute.xlu1 %391 }
  0x88   : > { %v343_v60 = vpop.permute.xlu0 %342 }
  0x89   : > { %367 = vst.msk [vmem:[#allocation3] sm:$0xff] %vm366_vm3, %v343_v60  ;;  %544 = vrot.lane.b32.xlu1 %v1178_v44, %s1044_s7 }
  0x8a   : > { %542 = vrot.lane.b32.xlu0 %v378_v47, %s1044_s7  ;;  %416 = vst.msk [vmem:[#allocation3] sm:$0xff] %vm415_vm4, %v392_v61  ;;  %686 = vrot.lane.b32.xlu2 %v377_v48, %s1047_s10 }
  0x8c   : > { %v353_v62 = vpop.permute.xlu2 %352 }
  0x8d   : > { %372 = vst.msk [vmem:[#allocation3 + $0x28] sm:$0xff] %vm366_vm3, %v353_v62 }
  0x91   : > { %501 = vrot.lane.b32.xlu1 %v333_v51, %s1043_s6 }
  0x92   : > { %647 = vrot.lane.b32.xlu0 %v333_v51, %s1046_s9  ;;  %454 = vrot.lane.b32.xlu2 %v431_v63, %s1042_s30 }
  0x93   : > { %v394_v0 = vpop.permute.xlu1 %393 }
  0x94   : > { %v345_v1 = vpop.permute.xlu0 %344  ;;  %v400_v2 = vpop.permute.xlu2 %399 }
  0x95   : > { %368 = vst.msk [vmem:[#allocation3 + $0x8] sm:$0xff] %vm366_vm3, %v345_v1 }
  0x96   : > { %420 = vst.msk [vmem:[#allocation3 + $0x20] sm:$0xff] %vm415_vm4, %v400_v2 }
  0x97   : > { %417 = vst.msk [vmem:[#allocation3 + $0x8] sm:$0xff] %vm415_vm4, %v394_v0 }
  0x99   : > { %594 = vrot.lane.b32.xlu1 %v1160_v34, %s1045_s8  ;;  %v995_v34 = vld [vmem:[%s1392_s3 + $0x10] sm:$0xff] }
  0x9a   : > { %592 = vrot.lane.b32.xlu0 %v1184_v45, %s1045_s8  ;;  %645 = vrot.lane.b32.xlu2 %v478_v49, %s1046_s9 }
  0x9b   : > { %v443_v3 = vpop.permute.xlu1 %442 }
  0x9c   : > { %v441_v4 = vpop.permute.xlu0 %440  ;;  %466 = vst.msk [vmem:[#allocation3 + $0x8] sm:$0xff] %vm464_vm5, %v443_v3  ;;  %v492_v5 = vpop.permute.xlu2 %491 }
  0x9d   : > { %465 = vst.msk [vmem:[#allocation3] sm:$0xff] %vm464_vm5, %v441_v4 }
  0x9e   : > { %515 = vst.msk [vmem:[#allocation3 + $0x8] sm:$0xff] %vm513_vm6, %v492_v5 }
  0xa1   : > { %550 = vrot.lane.b32.xlu1 %v382_v56, %s1044_s7 }
  0xa2   : > { %696 = vrot.lane.b32.xlu0 %v382_v56, %s1047_s10  ;;  %503 = vrot.lane.b32.xlu2 %v480_v6, %s1043_s6 }
  0xa3   : > { %v490_v7 = vpop.permute.xlu1 %489 }
  0xa4   : > { %v402_v8 = vpop.permute.xlu0 %401  ;;  %514 = vst.msk [vmem:[#allocation3] sm:$0xff] %vm513_vm6, %v490_v7  ;;  %v449_v9 = vpop.permute.xlu2 %448 }
  0xa5   : > { %421 = vst.msk [vmem:[#allocation3 + $0x28] sm:$0xff] %vm415_vm4, %v402_v8 }
  0xa6   : > { %469 = vst.msk [vmem:[#allocation3 + $0x20] sm:$0xff] %vm464_vm5, %v449_v9 }
  0xa9   : > { %643 = vrot.lane.b32.xlu1 %v1170_v40, %s1046_s9 }
  0xaa   : > { %641 = vrot.lane.b32.xlu0 %v1155_v33, %s1046_s9  ;;  %694 = vrot.lane.b32.xlu2 %v527_v57, %s1047_s10  ;;  %v996_v33 = vld [vmem:[%s1392_s3 + $0x18] sm:$0xff] }
  0xab   : > { %v349_v10 = vpop.permute.xlu1 %348  ;;  %788 = vmatpush.bf16.msra.mxu0 %v996_v33  ;;  %1001 = vmatpush.bf16.msra.mxu2 %v996_v33 }
  0xac   : > { %v347_v11 = vpop.permute.xlu0 %346  ;;  %370 = vst.msk [vmem:[#allocation3 + $0x18] sm:$0xff] %vm366_vm3, %v349_v10  ;;  %v541_v12 = vpop.permute.xlu2 %540  ;;  %1000 = vmatpush.bf16.msra.mxu1 %v996_v33  ;;  %1002 = vmatpush.bf16.msra.mxu3 %v996_v33 }
  0xad   : > { %369 = vst.msk [vmem:[#allocation3 + $0x10] sm:$0xff] %vm366_vm3, %v347_v11 }
  0xae   : > { %564 = vst.msk [vmem:[#allocation3 + $0x8] sm:$0xff] %vm562_vm7, %v541_v12 }
  0xaf   : > { %789 = vmatpush.bf16.msra.mxu0 %v995_v34  ;;  %1004 = vmatpush.bf16.msra.mxu2 %v995_v34 }
  0xb0   : > { %1003 = vmatpush.bf16.msra.mxu1 %v995_v34  ;;  %1005 = vmatpush.bf16.msra.mxu3 %v995_v34 }
  0xb1   : > { %690 = vrot.lane.b32.xlu1 %v1178_v44, %s1047_s10 }
  0xb2   : > { %602 = vrot.lane.b32.xlu0 %v579_v13, %s1045_s8  ;;  %552 = vrot.lane.b32.xlu2 %v529_v14, %s1044_s7 }
  0xb3   : > { %v539_v15 = vpop.permute.xlu1 %538 }
  0xb4   : > { %v451_v16 = vpop.permute.xlu0 %450  ;;  %563 = vst.msk [vmem:[#allocation3] sm:$0xff] %vm562_vm7, %v539_v15  ;;  %v498_v17 = vpop.permute.xlu2 %497 }
  0xb5   : > { %470 = vst.msk [vmem:[#allocation3 + $0x28] sm:$0xff] %vm464_vm5, %v451_v16 }
  0xb6   : > { %518 = vst.msk [vmem:[#allocation3 + $0x20] sm:$0xff] %vm513_vm6, %v498_v17 }
  0xb9   : > { %651 = vrot.lane.b32.xlu1 %v628_v18, %s1046_s9 }
  0xba   : > { %649 = vrot.lane.b32.xlu0 %v480_v6, %s1046_s9  ;;  %600 = vrot.lane.b32.xlu2 %v431_v63, %s1045_s8 }
  0xbb   : > { %v398_v19 = vpop.permute.xlu1 %397 }
  0xbc   : > { %v396_v20 = vpop.permute.xlu0 %395  ;;  %419 = vst.msk [vmem:[#allocation3 + $0x18] sm:$0xff] %vm415_vm4, %v398_v19  ;;  %v591_v21 = vpop.permute.xlu2 %590 }
  0xbd   : > { %418 = vst.msk [vmem:[#allocation3 + $0x10] sm:$0xff] %vm415_vm4, %v396_v20 }
  0xbe   : > { %614 = vst.msk [vmem:[#allocation3 + $0x8] sm:$0xff] %vm612_vm8, %v591_v21 }
  0xc2   : > { %700 = vrot.lane.b32.xlu0 %v677_v22, %s1047_s10  ;;  %692 = vrot.lane.b32.xlu2 %v1167_v38, %s1047_s10  ;;  %v994_v38 = vld [vmem:[%s1392_s3 + $0x8] sm:$0xff] }
  0xc3   : > { %v589_v23 = vpop.permute.xlu1 %588  ;;  %790 = vmatpush.bf16.msra.mxu0 %v994_v38  ;;  %1007 = vmatpush.bf16.msra.mxu2 %v994_v38 }
  0xc4   : > { %v500_v24 = vpop.permute.xlu0 %499  ;;  %613 = vst.msk [vmem:[#allocation3] sm:$0xff] %vm612_vm8, %v589_v23  ;;  %v445_v25 = vpop.permute.xlu2 %444  ;;  %1006 = vmatpush.bf16.msra.mxu1 %v994_v38  ;;  %1008 = vmatpush.bf16.msra.mxu3 %v994_v38 }
  0xc5   : > { %519 = vst.msk [vmem:[#allocation3 + $0x28] sm:$0xff] %vm513_vm6, %v500_v24 }
  0xc6   : > { %467 = vst.msk [vmem:[#allocation3 + $0x10] sm:$0xff] %vm464_vm5, %v445_v25 }
  0xc7   : > { %791 = vmatpush.bf16.msra.mxu0 %v993_v39  ;;  %1010 = vmatpush.bf16.msra.mxu2 %v993_v39 }
  0xc8   : > { %1009 = vmatpush.bf16.msra.mxu1 %v993_v39  ;;  %1011 = vmatpush.bf16.msra.mxu3 %v993_v39 }
  0xca   : > { %698 = vrot.lane.b32.xlu2 %v529_v14, %s1047_s10 }
  0xcb   : > { %v357_v30 = vpop.permute.xlu1 %356 }
  0xcc   : > { %v355_v31 = vpop.permute.xlu0 %354  ;;  %374 = vst.msk [vmem:[#allocation3 + $0x38] sm:$0xff] %vm366_vm3, %v357_v30  ;;  %v549_v32 = vpop.permute.xlu2 %548 }
  0xcd   : > { %373 = vst.msk [vmem:[#allocation3 + $0x30] sm:$0xff] %vm366_vm3, %v355_v31 }
  0xce   : > { %568 = vst.msk [vmem:[#allocation3 + $0x28] sm:$0xff] %vm562_vm7, %v549_v32 }
  0xd3   : > { %v547_v35 = vpop.permute.xlu1 %546 }
  0xd4   : > { %v447_v36 = vpop.permute.xlu0 %446  ;;  %567 = vst.msk [vmem:[#allocation3 + $0x20] sm:$0xff] %vm562_vm7, %v547_v35  ;;  %v404_v37 = vpop.permute.xlu2 %403 }
  0xd5   : > { %468 = vst.msk [vmem:[#allocation3 + $0x18] sm:$0xff] %vm464_vm5, %v447_v36 }
  0xd6   : > { %422 = vst.msk [vmem:[#allocation3 + $0x30] sm:$0xff] %vm415_vm4, %v404_v37 }
  0xdb   : > { %v640_v40 = vpop.permute.xlu1 %639 }
  0xdc   : > { %v638_v41 = vpop.permute.xlu0 %637  ;;  %663 = vst.msk [vmem:[#allocation3 + $0x8] sm:$0xff] %vm661_vm10, %v640_v40  ;;  %v496_v42 = vpop.permute.xlu2 %495 }
  0xdd   : > { %662 = vst.msk [vmem:[#allocation3] sm:$0xff] %vm661_vm10, %v638_v41 }
  0xde   : > { %517 = vst.msk [vmem:[#allocation3 + $0x18] sm:$0xff] %vm513_vm6, %v496_v42 }
  0xe3   : > { %v494_v43 = vpop.permute.xlu1 %493 }
  0xe4   : > { %v406_v44 = vpop.permute.xlu0 %405  ;;  %516 = vst.msk [vmem:[#allocation3 + $0x10] sm:$0xff] %vm513_vm6, %v494_v43  ;;  %v687_v45 = vpop.permute.xlu2 %686 }
  0xe5   : > { %423 = vst.msk [vmem:[#allocation3 + $0x38] sm:$0xff] %vm415_vm4, %v406_v44 }
  0xe6   : > { %711 = vst.msk [vmem:[#allocation3] sm:$0xff] %vm710_vm11, %v687_v45 }
  0xeb   : > { %v599_v46 = vpop.permute.xlu1 %598 }
  0xec   : > { %v597_v47 = vpop.permute.xlu0 %596  ;;  %618 = vst.msk [vmem:[#allocation3 + $0x28] sm:$0xff] %vm612_vm8, %v599_v46  ;;  %v455_v48 = vpop.permute.xlu2 %454 }
  0xed   : > { %617 = vst.msk [vmem:[#allocation3 + $0x20] sm:$0xff] %vm612_vm8, %v597_v47  ;;  %v719_v52 = vld [vmem:[#allocation3] sm:$0xff] }
  0xee   : > { %472 = vst.msk [vmem:[#allocation3 + $0x38] sm:$0xff] %vm464_vm5, %v455_v48 }
  0xf3   : > { %v453_v49 = vpop.permute.xlu1 %452 }
  0xf4   : > { %v689_v50 = vpop.permute.xlu0 %688  ;;  %471 = vst.msk [vmem:[#allocation3 + $0x30] sm:$0xff] %vm464_vm5, %v453_v49  ;;  %v646_v51 = vpop.permute.xlu2 %645 }
  0xf5   : > { %712 = vst.msk [vmem:[#allocation3 + $0x8] sm:$0xff] %vm710_vm11, %v689_v50 }
  0xf6   : > { %666 = vst.msk [vmem:[#allocation3 + $0x20] sm:$0xff] %vm661_vm10, %v646_v51 }
  0xfb   : > { %v545_v53 = vpop.permute.xlu1 %544 }
  0xfc   : > { %v543_v54 = vpop.permute.xlu0 %542  ;;  %566 = vst.msk [vmem:[#allocation3 + $0x18] sm:$0xff] %vm562_vm7, %v545_v53  ;;  %v720_v55 = vld [vmem:[#allocation3 + $0x8] sm:$0xff]  ;;  %v504_v56 = vpop.permute.xlu2 %503 }
  0xfd   : > { %565 = vst.msk [vmem:[#allocation3 + $0x10] sm:$0xff] %vm562_vm7, %v543_v54  ;;  %v727_v57 = vpack.c.bf16 %v720_v55, %v719_v52 }
  0xfe   : > { %521 = vst.msk [vmem:[#allocation3 + $0x38] sm:$0xff] %vm513_vm6, %v504_v56 }
  0xff   : > { %985 = vmatmul.msk.bf16.vlgmr.msra.gmra.mxu0 %vm767_vm12, %v727_v57 }
 0x103   : > { %v502_v58 = vpop.permute.xlu1 %501 }
 0x104   : > { %v648_v59 = vpop.permute.xlu0 %647  ;;  %520 = vst.msk [vmem:[#allocation3 + $0x30] sm:$0xff] %vm513_vm6, %v502_v58  ;;  %v695_v60 = vpop.permute.xlu2 %694 }
 0x105   : > { %667 = vst.msk [vmem:[#allocation3 + $0x28] sm:$0xff] %vm661_vm10, %v648_v59 }
 0x106   : > { %715 = vst.msk [vmem:[#allocation3 + $0x20] sm:$0xff] %vm710_vm11, %v695_v60 }
 0x10b   : > { %v595_v61 = vpop.permute.xlu1 %594 }
 0x10c   : > { %v593_v62 = vpop.permute.xlu0 %592  ;;  %616 = vst.msk [vmem:[#allocation3 + $0x18] sm:$0xff] %vm612_vm8, %v595_v61  ;;  %v553_v63 = vpop.permute.xlu2 %552 }
 0x10d   : > { %615 = vst.msk [vmem:[#allocation3 + $0x10] sm:$0xff] %vm612_vm8, %v593_v62  ;;  %v723_v3 = vld [vmem:[#allocation3 + $0x20] sm:$0xff] }
 0x10e   : > { %570 = vst.msk [vmem:[#allocation3 + $0x38] sm:$0xff] %vm562_vm7, %v553_v63 }
 0x113   : > { %v551_v0 = vpop.permute.xlu1 %550 }
 0x114   : > { %v697_v1 = vpop.permute.xlu0 %696  ;;  %569 = vst.msk [vmem:[#allocation3 + $0x30] sm:$0xff] %vm562_vm7, %v551_v0  ;;  %v601_v2 = vpop.permute.xlu2 %600 }
 0x115   : > { %716 = vst.msk [vmem:[#allocation3 + $0x28] sm:$0xff] %vm710_vm11, %v697_v1 }
 0x116   : > { %619 = vst.msk [vmem:[#allocation3 + $0x30] sm:$0xff] %vm612_vm8, %v601_v2 }
 0x11b   : > { %v644_v4 = vpop.permute.xlu1 %643 }
 0x11c   : > { %v642_v5 = vpop.permute.xlu0 %641  ;;  %665 = vst.msk [vmem:[#allocation3 + $0x18] sm:$0xff] %vm661_vm10, %v644_v4  ;;  %v724_v6 = vld [vmem:[#allocation3 + $0x28] sm:$0xff]  ;;  %v693_v7 = vpop.permute.xlu2 %692 }
 0x11d   : > { %664 = vst.msk [vmem:[#allocation3 + $0x10] sm:$0xff] %vm661_vm10, %v642_v5  ;;  %v729_v8 = vpack.c.bf16 %v724_v6, %v723_v3 }
 0x11e   : > { %714 = vst.msk [vmem:[#allocation3 + $0x18] sm:$0xff] %vm710_vm11, %v693_v7 }
 0x11f   : > { %987 = vmatmul.msk.bf16.vlgmr.msra.gmra.mxu2 %vm767_vm12, %v729_v8 }
 0x123   : > { %v691_v9 = vpop.permute.xlu1 %690 }
 0x124   : > { %v603_v10 = vpop.permute.xlu0 %602  ;;  %713 = vst.msk [vmem:[#allocation3 + $0x10] sm:$0xff] %vm710_vm11, %v691_v9  ;;  %v699_v12 = vpop.permute.xlu2 %698 }
 0x125   : > { %620 = vst.msk [vmem:[#allocation3 + $0x38] sm:$0xff] %vm612_vm8, %v603_v10  ;;  %v722_v11 = vld [vmem:[#allocation3 + $0x18] sm:$0xff] }
 0x12b   : > { %v721_v14 = vld [vmem:[#allocation3 + $0x10] sm:$0xff]  ;;  %v652_v15 = vpop.permute.xlu1 %651 }
 0x12c   : > { %v650_v13 = vpop.permute.xlu0 %649  ;;  %v728_v16 = vpack.c.bf16 %v722_v11, %v721_v14  ;;  %669 = vst.msk [vmem:[#allocation3 + $0x38] sm:$0xff] %vm661_vm10, %v652_v15 }
 0x12d   : > { %668 = vst.msk [vmem:[#allocation3 + $0x30] sm:$0xff] %vm661_vm10, %v650_v13 }
 0x12e   : > { %986 = vmatmul.msk.bf16.vlgmr.msra.gmra.mxu1 %vm767_vm12, %v728_v16  ;;  %717 = vst.msk [vmem:[#allocation3 + $0x30] sm:$0xff] %vm710_vm11, %v699_v12 }
 0x134   : > { %v701_v17 = vpop.permute.xlu0 %700 }
 0x135   : > { %718 = vst.msk [vmem:[#allocation3 + $0x38] sm:$0xff] %vm710_vm11, %v701_v17  ;;  %v725_v18 = vld [vmem:[#allocation3 + $0x30] sm:$0xff] }
 0x13c   : > { %v726_v19 = vld [vmem:[#allocation3 + $0x38] sm:$0xff] }
 0x13d   : > { %v730_v20 = vpack.c.bf16 %v726_v19, %v725_v18 }
 0x13f   : > { %988 = vmatmul.msk.bf16.vlgmr.msra.gmra.mxu3 %vm767_vm12, %v730_v20 }
 0x17c   : > { %v793_v21 = vpop.f32.mrf.mxu0 }
 0x17d   : > { %813 = vst.msk [vmem:[%s1346_s26] sm:$0xff] %vm278_vm0, %v793_v21  ;;  %v843_v28 = vmul.f32 %v793_v21, %v793_v21  ;;  %v821_v31 = vsel %vm278_vm0, %v793_v21, 0.0 }
 0x17f   : > { %v851_v36 = vsel %vm278_vm0, %v843_v28, 0.0 }
 0x184   : > { %v795_v22 = vpop.f32.mrf.mxu0 }
 0x185   : > { %814 = vst.msk [vmem:[%s1346_s26 + $0x8] sm:$0xff] %vm278_vm0, %v795_v22  ;;  %v844_v27 = vmul.f32 %v795_v22, %v795_v22  ;;  %v822_v29 = vsel %vm278_vm0, %v795_v22, 0.0 }
 0x186   : > { %v823_v35 = vadd.f32 %v822_v29, %v821_v31 }
 0x187   : > { %v852_v32 = vsel %vm278_vm0, %v844_v27, 0.0 }
 0x188   : > { %v853_v39 = vadd.f32 %v852_v32, %v851_v36 }
 0x1a2   : > { %v803_v23 = vpop.f32.mrf.mxu2 }
 0x1a3   : > { %817 = vst.msk [vmem:[%s1346_s26 + $0x20] sm:$0xff] %vm278_vm0, %v803_v23  ;;  %v847_v44 = vmul.f32 %v803_v23, %v803_v23  ;;  %v828_v47 = vsel %vm278_vm0, %v803_v23, 0.0 }
 0x1a5   : > { %v858_v49 = vsel %vm278_vm0, %v847_v44, 0.0 }
 0x1aa   : > { %v805_v24 = vpop.f32.mrf.mxu2 }
 0x1ab   : > { %818 = vst.msk [vmem:[%s1346_s26 + $0x28] sm:$0xff] %vm278_vm0, %v805_v24  ;;  %v798_v25 = vpop.f32.mrf.mxu1  ;;  %v848_v50 = vmul.f32 %v805_v24, %v805_v24  ;;  %v830_v53 = vsel %vm278_vm0, %v805_v24, 0.0 }
 0x1ac   : > { %815 = vst.msk [vmem:[%s1346_s26 + $0x10] sm:$0xff] %vm278_vm0, %v798_v25  ;;  %v845_v30 = vmul.f32 %v798_v25, %v798_v25  ;;  %v824_v33 = vsel %vm278_vm0, %v798_v25, 0.0 }
 0x1ad   : > { %v825_v40 = vadd.f32 %v824_v33, %v823_v35  ;;  %v860_v56 = vsel %vm278_vm0, %v848_v50, 0.0 }
 0x1ae   : > { %v854_v37 = vsel %vm278_vm0, %v845_v30, 0.0 }
 0x1af   : > { %v855_v42 = vadd.f32 %v854_v37, %v853_v39 }
 0x1b3   : > { %v800_v26 = vpop.f32.mrf.mxu1 }
 0x1b4   : > { %816 = vst.msk [vmem:[%s1346_s26 + $0x18] sm:$0xff] %vm278_vm0, %v800_v26  ;;  %v846_v34 = vmul.f32 %v800_v26, %v800_v26  ;;  %v826_v38 = vsel %vm278_vm0, %v800_v26, 0.0 }
 0x1b5   : > { %v827_v43 = vadd.f32 %v826_v38, %v825_v40 }
 0x1b6   : > { %v856_v41 = vsel %vm278_vm0, %v846_v34, 0.0 }
 0x1b7   : > { %v857_v45 = vadd.f32 %v856_v41, %v855_v42  ;;  %v829_v48 = vadd.f32 %v828_v47, %v827_v43 }
 0x1b9   : > { %v859_v52 = vadd.f32 %v858_v49, %v857_v45  ;;  %v831_v55 = vadd.f32 %v830_v53, %v829_v48 }
 0x1bb   : > { %v861_v59 = vadd.f32 %v860_v56, %v859_v52 }
 0x1c2   : > { %v808_v46 = vpop.f32.mrf.mxu3 }
 0x1c3   : > { %819 = vst.msk [vmem:[%s1346_s26 + $0x30] sm:$0xff] %vm278_vm0, %v808_v46  ;;  %v849_v51 = vmul.f32 %v808_v46, %v808_v46  ;;  %v832_v54 = vsel %vm278_vm0, %v808_v46, 0.0 }
 0x1c4   : > { %v833_v58 = vadd.f32 %v832_v54, %v831_v55 }
 0x1c5   : > { %v862_v57 = vsel %vm278_vm0, %v849_v51, 0.0 }
 0x1c6   : > { %v863_v63 = vadd.f32 %v862_v57, %v861_v59 }
 0x1ca   : > { %v810_v60 = vpop.f32.mrf.mxu3 }
 0x1cb   : > { %820 = vst.msk [vmem:[%s1346_s26 + $0x38] sm:$0xff] %vm278_vm0, %v810_v60  ;;  %v834_v61 = vsel %vm278_vm0, %v810_v60, 0.0  ;;  %v850_v62 = vmul.f32 %v810_v60, %v810_v60 }
 0x1cc   : > { %v835_v0 = vadd.f32 %v834_v61, %v833_v58 }
 0x1cd   : > { %v864_v1 = vsel %vm278_vm0, %v850_v62, 0.0 }
 0x1ce   : > { %v836_v2 = vrot.slane %v835_v0, 4  ;;  %v865_v3 = vadd.f32 %v864_v1, %v863_v63 }
 0x1d0   : > { %v837_v4 = vadd.f32 %v836_v2, %v835_v0  ;;  %v866_v5 = vrot.slane %v865_v3, 4 }
 0x1d2   : > { %v838_v6 = vrot.slane %v837_v4, 2  ;;  %v867_v7 = vadd.f32 %v866_v5, %v865_v3 }
 0x1d4   : > { %v839_v8 = vadd.f32 %v838_v6, %v837_v4  ;;  %v868_v9 = vrot.slane %v867_v7, 2 }
 0x1d6   : > { %v840_v10 = vrot.slane %v839_v8, 1  ;;  %v869_v11 = vadd.f32 %v868_v9, %v867_v7 }
 0x1d8   : > { %v841_v12 = vadd.f32 %v840_v10, %v839_v8  ;;  %v870_v13 = vrot.slane %v869_v11, 1 }
 0x1da   : > { %842 = vst.msk [vmem:[%s235_s29] sm:$0x1] %vm293_vm2, %v841_v12  ;;  %v871_v14 = vadd.f32 %v870_v13, %v869_v11 }
 0x1dc   : > { %872 = vst.msk [vmem:[%s235_s29 + $0x1] sm:$0x1] %vm293_vm2, %v871_v14 }
 0x1dd PF: > { %s16_s18 = sadd.s32 1, %s1037_s18  }
 0x1de   : > { %p13_p4 = scmp.ge.s32.totalorder %s16_s18, 4  }
 0x1e0   :  { %15 = sbr.rel (!%p13_p4) target bundleno = 1 (0x1), region = 81 }

</bundles_post_ra>
